<compile_context>
chip_gen: v7x
topology: tpu7x:2x2x1
jax: 0.10.0
libtpu: 0.0.40
codegen_flags: <defaults>
</compile_context>

<pallas_src>
import functools

import jax
import jax.numpy as jnp
from jax import lax
from jax.experimental import pallas as pl
from jax.experimental.pallas import tpu as pltpu

_MXU_DTYPE = jnp.bfloat16


# ---------------------------------------------------------------------------
# Pallas kernel: grid = (model, vocab_tile)
# ---------------------------------------------------------------------------
def decoder_step_kernel(
    x_ref,        # (1, B, E)     embedded input tokens             f32
    enc_ref,      # (1, B, T, H)  encoder outputs, batch-major      bf16
    h_ref,        # (1, B, H)     previous hidden                   f32
    c_ref,        # (1, B, H)     previous cell                     f32
    feed_ref,     # (1, B, H)     previous input feed               f32
    wx_ref,       # (1, E, 4H)    token-input -> gates              bf16
    wrec_ref,     # (1, 2H, 4H)   [input_feed; hidden] -> gates     bf16
    bg_ref,       # (1, 1, 4H)    gate bias (b_ih + b_hh folded)    f32
    wcomb_ref,    # (1, 2H, H)    [hidden; context] -> combined     bf16
    bcomb_ref,    # (1, 1, H)                                       f32
    wvoc_ref,     # (1, H, TV)    vocab projection tile             bf16
    bvoc_ref,     # (1, 1, TV)                                      f32
    logits_ref,   # (1, B, TV)    RAW logits tile                   f32
    lse_ref,      # (1, B, 1)     per-row logsumexp                 f32
    attn_ref,     # (1, B, T)     attention weights                 f32
    hout_ref,     # (1, B, H)
    cout_ref,     # (1, B, H)
    feedout_ref,  # (1, B, H)
    comb_sc,      # VMEM (B, H)   combined output, bf16 MXU operand
    m_sc,         # VMEM (B, 1)   running max of logits
    l_sc,         # VMEM (B, 1)   running sum of exp(logits - max)
):
    v = pl.program_id(1)

    # ---- recurrent step: only on the first vocab tile of each model --------
    @pl.when(v == 0)
    def _step():
        x = x_ref[0]                                   # (B, E)   f32
        h_prev = h_ref[0]                              # (B, H)
        c_prev = c_ref[0]
        feed = feed_ref[0]
        enc = enc_ref[0].astype(jnp.float32)           # (B, T, H)
        H = h_prev.shape[1]

        # LSTMCell with input feed.  Gate order is [i, f, o, g] (one fused
        # sigmoid over 3H lanes) and b_ih+b_hh are folded; a real checkpoint
        # import must reorder PyTorch's (i, f, g, o) weights and sum biases.
        rec_in = jnp.concatenate([feed, h_prev], axis=1).astype(_MXU_DTYPE)
        gates = (
            jnp.dot(x.astype(_MXU_DTYPE), wx_ref[0],
                    preferred_element_type=jnp.float32)
            + jnp.dot(rec_in, wrec_ref[0], preferred_element_type=jnp.float32)
            + bg_ref[0]
        )                                              # (B, 4H) f32
        ifo = jax.nn.sigmoid(gates[:, : 3 * H])
        i_g = ifo[:, :H]
        f_g = ifo[:, H: 2 * H]
        o_g = ifo[:, 2 * H: 3 * H]
        g_g = jnp.tanh(gates[:, 3 * H:])
        c_new = f_g * c_prev + i_g * g_g
        h_new = o_g * jnp.tanh(c_new)

        # Dot-product attention (src_length_masking disabled by the ensemble).
        # Elementwise+reduce forms instead of degenerate M=1 batched matmuls.
        s = jnp.sum(h_new[:, None, :] * enc, axis=-1)            # (B, T)
        s = s - jnp.max(s, axis=-1, keepdims=True)
        p = jnp.exp(s)
        alpha = p / jnp.sum(p, axis=-1, keepdims=True)
        ctx = jnp.sum(alpha[:, :, None] * enc, axis=1)           # (B, H)

        # Output combination: tanh([h_new; ctx] @ w_comb + b)
        comb_in = jnp.concatenate([h_new, ctx], axis=1).astype(_MXU_DTYPE)
        combined = jnp.tanh(
            jnp.dot(comb_in, wcomb_ref[0], preferred_element_type=jnp.float32)
            + bcomb_ref[0]
        )                                                        # (B, H) f32

        attn_ref[0] = alpha
        hout_ref[0] = h_new
        cout_ref[0] = c_new
        # fairseq-style LSTM decoder: the combined attention output is the
        # next input_feed.  TODO(synk): some variants feed the raw context.
        feedout_ref[0] = combined

        comb_sc[...] = combined.astype(_MXU_DTYPE)
        m_sc[...] = jnp.full_like(m_sc, -jnp.inf)
        l_sc[...] = jnp.zeros_like(l_sc)

    # ---- vocab projection tile + online logsumexp ---------------------------
    logits = (
        jnp.dot(comb_sc[...], wvoc_ref[0], preferred_element_type=jnp.float32)
        + bvoc_ref[0]
    )                                                            # (B, TV)
    logits_ref[0] = logits

    tile_max = jnp.max(logits, axis=-1, keepdims=True)
    m_new = jnp.maximum(m_sc[...], tile_max)
    l_sc[...] = l_sc[...] * jnp.exp(m_sc[...] - m_new) + jnp.sum(
        jnp.exp(logits - m_new), axis=-1, keepdims=True)
    m_sc[...] = m_new

    @pl.when(v == pl.num_programs(1) - 1)
    def _finish():
        lse_ref[0] = m_sc[...] + jnp.log(l_sc[...])


# ---------------------------------------------------------------------------
# Wrapper: one gridded pallas_call over (models, vocab tiles)
# ---------------------------------------------------------------------------
def _pad_batch(x, b_pad, axis):
    pad = b_pad - x.shape[axis]
    if pad <= 0:
        return x
    widths = [(0, 0)] * x.ndim
    widths[axis] = (0, pad)
    return jnp.pad(x, widths)


def _vmem_limit_bytes(B, E, T, H, tv):
    f32, bf16 = 4, 2
    per_model_in = (B * E * f32 + B * T * H * bf16 + 3 * B * H * f32
                    + E * 4 * H * bf16 + 2 * H * 4 * H * bf16 + 4 * H * f32
                    + 2 * H * H * bf16 + H * f32)
    per_tile_in = H * tv * bf16 + tv * f32
    out_bytes = B * tv * f32 + B * f32 + B * T * f32 + 3 * B * H * f32
    scratch = B * H * bf16 + 2 * B * f32
    db = 2 * (per_model_in + per_tile_in + out_bytes) + scratch  # double-buffered
    # Clamp so the same call fits v7x (64 MiB physical VMEM) and never shrinks
    # below the largest default scoped limit (32 MiB on v6e/v7x).
    return int(min(56 << 20, max(32 << 20, int(2.5 * db) + (4 << 20))))


def prepare_encoder_outputs(encoder_outputs):
    """Hoisted out of the per-step loop: seq-major (T,B,H) f32 encoder outputs
    -> batch-major (N,B,T,H) bf16, computed once after encoding."""
    return jnp.stack(
        [jnp.transpose(e, (1, 0, 2)) for e in encoder_outputs], axis=0
    ).astype(_MXU_DTYPE)


def run_decoder_step_ensemble(params, x_emb, enc_bth, h_prev, c_prev,
                              feed_prev, vocab_tile):
    """x_emb (N,B,E) f32, enc_bth (N,B,T,H) bf16, states (N,B,H) f32."""
    N, B, E = x_emb.shape
    T = enc_bth.shape[2]
    H = h_prev.shape[2]
    V = params["w_vocab"].shape[2]

    tv = vocab_tile
    if tv <= 0 or V % tv != 0 or tv % 128 != 0:
        tv = V                     # fall back to a single full-V tile
    n_vt = V // tv

    # Pad hypotheses to a multiple of 16 sublanes (bf16 MXU operands).
    B_pad = max(16, -(-B // 16) * 16)
    x_emb = _pad_batch(x_emb, B_pad, 1)
    enc_bth = _pad_batch(enc_bth, B_pad, 1)
    h_prev = _pad_batch(h_prev, B_pad, 1)
    c_prev = _pad_batch(c_prev, B_pad, 1)
    feed_prev = _pad_batch(feed_prev, B_pad, 1)

    mdl3 = lambda n, v: (n, 0, 0)
    mdl4 = lambda n, v: (n, 0, 0, 0)
    voc3 = lambda n, v: (n, 0, v)

    in_specs = [
        pl.BlockSpec((1, B_pad, E), mdl3),        # x
        pl.BlockSpec((1, B_pad, T, H), mdl4),     # enc (bf16)
        pl.BlockSpec((1, B_pad, H), mdl3),        # h
        pl.BlockSpec((1, B_pad, H), mdl3),        # c
        pl.BlockSpec((1, B_pad, H), mdl3),        # input_feed
        pl.BlockSpec((1, E, 4 * H), mdl3),        # w_x
        pl.BlockSpec((1, 2 * H, 4 * H), mdl3),    # w_rec  = [w_feed; w_hh]
        pl.BlockSpec((1, 1, 4 * H), mdl3),        # b_gates
        pl.BlockSpec((1, 2 * H, H), mdl3),        # w_comb = [w_ch; w_cc]
        pl.BlockSpec((1, 1, H), mdl3),            # b_comb
        pl.BlockSpec((1, H, tv), voc3),           # w_vocab tile
        pl.BlockSpec((1, 1, tv), voc3),           # b_vocab tile
    ]
    out_specs = (
        pl.BlockSpec((1, B_pad, tv), voc3),       # raw logits
        pl.BlockSpec((1, B_pad, 1), mdl3),        # per-row logsumexp
        pl.BlockSpec((1, B_pad, T), mdl3),        # attention
        pl.BlockSpec((1, B_pad, H), mdl3),        # h_next
        pl.BlockSpec((1, B_pad, H), mdl3),        # c_next
        pl.BlockSpec((1, B_pad, H), mdl3),        # input_feed_next
    )
    out_shapes = (
        jax.ShapeDtypeStruct((N, B_pad, V), jnp.float32),
        jax.ShapeDtypeStruct((N, B_pad, 1), jnp.float32),
        jax.ShapeDtypeStruct((N, B_pad, T), jnp.float32),
        jax.ShapeDtypeStruct((N, B_pad, H), jnp.float32),
        jax.ShapeDtypeStruct((N, B_pad, H), jnp.float32),
        jax.ShapeDtypeStruct((N, B_pad, H), jnp.float32),
    )
    scratch_shapes = [
        pltpu.VMEM((B_pad, H), _MXU_DTYPE),       # combined (MXU operand)
        pltpu.VMEM((B_pad, 1), jnp.float32),      # running max
        pltpu.VMEM((B_pad, 1), jnp.float32),      # running sum-exp
    ]

    logits, lse, attn, h_next, c_next, feed_next = pl.pallas_call(
        decoder_step_kernel,
        out_shape=out_shapes,
        grid=(N, n_vt),
        in_specs=in_specs,
        out_specs=out_specs,
        scratch_shapes=scratch_shapes,
        compiler_params=pltpu.CompilerParams(
            # model axis parallel -> v7x's 2 TCs split the ensemble;
            # vocab-tile axis arbitrary -> sequential online lse accumulation.
            dimension_semantics=("parallel", "arbitrary"),
            vmem_limit_bytes=_vmem_limit_bytes(B_pad, E, T, H, tv)),
    )(
        x_emb, enc_bth, h_prev, c_prev, feed_prev,
        params["w_x"], params["w_rec"], params["b_gates"],
        params["w_comb"], params["b_comb"],
        params["w_vocab"], params["b_vocab"],
    )

    # Finish log_softmax in JAX: per-row constant, top-k ordering unchanged.
    logp = logits[:, :B] - lse[:, :B]
    return (logp, attn[:, :B], h_next[:, :B], c_next[:, :B], feed_next[:, :B])


# ---------------------------------------------------------------------------
# Full DecoderBatchedStepEnsemble.forward
# ---------------------------------------------------------------------------
@functools.partial(jax.jit, static_argnums=(2, 3))
def decoder_batched_step_ensemble_forward(params, word_rewards, beam_size,
                                          vocab_tile, enc_bth,
                                          input_tokens, prev_scores, timestep,
                                          *inputs):
    """Mirrors DecoderBatchedStepEnsemble.forward (single decoder layer,
    vocab_reduction_module=None, tile_internal=False).

    enc_bth: precomputed once via prepare_encoder_outputs (hoisted transpose).
    inputs layout: [enc_out_0 (T,B,H), ..., enc_out_{N-1},
                    h_0 (B,H), c_0 (B,H), input_feed_0 (B,H),
                    h_1, c_1, input_feed_1, ...]
    Returns (best_tokens, best_scores, prev_hypos, attention_weights,
             fixed_input_0..N-1, state_output_0..3N-1).
    """
    del timestep  # unused by the step, as in the PyTorch module
    num_models = params["w_rec"].shape[0]

    encoder_outputs = list(inputs[:num_models])
    states = inputs[num_models:]
    h_prev = jnp.stack([states[3 * i + 0] for i in range(num_models)], axis=0)
    c_prev = jnp.stack([states[3 * i + 1] for i in range(num_models)], axis=0)
    feed_prev = jnp.stack([states[3 * i + 2] for i in range(num_models)], axis=0)

    # Per-model embedding lookup (gather stays in plain JAX).
    x_emb = jnp.take(params["embedding"], input_tokens, axis=1)  # (N, B, E)

    logp, attn, h_next, c_next, feed_next = run_decoder_step_ensemble(
        params, x_emb, enc_bth, h_prev, c_prev, feed_prev, vocab_tile)

    # ---- ensemble averaging + two-stage beam top-k (plain JAX) --------------
    avg_log_probs = jnp.mean(logp, axis=0)           # (B, V)
    avg_attn = jnp.mean(attn, axis=0)                # (B, T)

    best_scores_k, best_tokens_k = lax.top_k(avg_log_probs, beam_size)  # (B,k)
    total_scores_k = best_scores_k + prev_scores[:, None]
    total_flat = total_scores_k.reshape(-1)
    tokens_flat = best_tokens_k.reshape(-1)

    best_scores, best_indices = lax.top_k(total_flat, beam_size)
    best_tokens = tokens_flat[best_indices]
    prev_hypos = (best_indices // beam_size).astype(jnp.int32)
    attention_weights = avg_attn[prev_hypos]                      # (k, T)
    # The provided reference adds word rewards AFTER both top-k stages.
    best_scores = best_scores + word_rewards[best_tokens]

    outputs = [best_tokens, best_scores, prev_hypos, attention_weights]
    outputs.extend(encoder_outputs)                  # fixed inputs pass through
    for i in range(num_models):                      # reordered recurrent state
        outputs.append(h_next[i][prev_hypos])
        outputs.append(c_next[i][prev_hypos])
        outputs.append(feed_next[i][prev_hypos])
    return tuple(outputs)


# ---------------------------------------------------------------------------
# Synthetic stacked-ensemble parameters
# ---------------------------------------------------------------------------
def make_stacked_decoder_params(key, num_models, vocab, embed_dim, hidden_dim):
    N, E, H, V = num_models, embed_dim, hidden_dim, vocab
    ks = jax.random.split(key, 9)
    s = 0.08

    def w(k, shape, dtype=_MXU_DTYPE):
        return (jax.random.normal(k, shape, jnp.float32) * s).astype(dtype)

    return {
        "embedding": w(ks[0], (N, V, E), jnp.float32),
        # LSTMCell weights, gate order [i, f, o, g]; w_rec stacks the
        # input-feed rows on top of the hidden rows (lane-aligned concat).
        "w_x":     w(ks[1], (N, E, 4 * H)),
        "w_rec":   w(ks[2], (N, 2 * H, 4 * H)),
        "b_gates": w(ks[3], (N, 1, 4 * H), jnp.float32),
        # output combination: tanh([h_new; ctx] @ w_comb + b_comb)
        "w_comb":  w(ks[4], (N, 2 * H, H)),
        "b_comb":  w(ks[5], (N, 1, H), jnp.float32),
        # vocab projection (TODO(synk): int8/fp8 quantization per generation)
        "w_vocab": w(ks[6], (N, H, V)),
        "b_vocab": w(ks[7], (N, 1, V), jnp.float32),
    }


if __name__ == "__main__":
    NUM_MODELS = 2
    BEAM = 2
    B = BEAM          # hypotheses in flight after the first step
    T = 8             # source length
    EMBED = 64
    HIDDEN = 128      # multiple of 128 -> lane-dense gate slices & stores
    VOCAB = 512
    VOCAB_TILE = 256  # 2 vocab tiles here; use 2048-4096 at production sizes
    EOS_IDX, UNK_IDX = 2, 3
    WORD_REWARD, UNK_REWARD = 0.25, -0.5

    root = jax.random.PRNGKey(0)
    keys = iter(jax.random.split(root, 3 + 4 * NUM_MODELS))
    kp, kt, ksc = next(keys), next(keys), next(keys)

    params = make_stacked_decoder_params(kp, NUM_MODELS, VOCAB, EMBED, HIDDEN)

    word_rewards = jnp.full((VOCAB,), WORD_REWARD, jnp.float32)
    word_rewards = word_rewards.at[EOS_IDX].set(0.0)
    word_rewards = word_rewards.at[UNK_IDX].set(WORD_REWARD + UNK_REWARD)

    input_tokens = jax.random.randint(kt, (B,), 0, VOCAB, dtype=jnp.int32)
    prev_scores = jax.random.normal(ksc, (B,), jnp.float32)
    timestep = jnp.array(1, jnp.int32)

    flat_inputs = []
    for _ in range(NUM_MODELS):     # encoder outputs (seq-major, like PyTorch)
        flat_inputs.append(
            jax.random.normal(next(keys), (T, B, HIDDEN), jnp.float32) * 0.1)
    for _ in range(NUM_MODELS):     # h, c, input_feed per model
        for _ in range(3):
            flat_inputs.append(
                jax.random.normal(next(keys), (B, HIDDEN), jnp.float32) * 0.1)

    # Hoisted: batch-major bf16 encoder copy, computed ONCE per sentence.
    enc_bth = prepare_encoder_outputs(flat_inputs[:NUM_MODELS])

    outs = decoder_batched_step_ensemble_forward(
        params, word_rewards, BEAM, VOCAB_TILE, enc_bth,
        input_tokens, prev_scores, timestep, *flat_inputs)
    outs = jax.block_until_ready(outs)

    best_tokens, best_scores, prev_hypos, attention_weights = outs[:4]
    assert best_tokens.shape == (BEAM,)
    assert best_scores.shape == (BEAM,)
    assert prev_hypos.shape == (BEAM,)
    assert attention_weights.shape == (BEAM, T)
    assert len(outs) == 4 + NUM_MODELS + 3 * NUM_MODELS
    assert outs[4].shape == (T, B, HIDDEN)                 # fixed_input_0
    assert outs[4 + NUM_MODELS].shape == (BEAM, HIDDEN)    # state_output_0
    assert bool(jnp.all(jnp.isfinite(best_scores)))
    assert bool(jnp.all(jnp.isfinite(attention_weights)))

    print("KERNEL_OK")
</pallas_src>

<mosaic_0001>
module attributes {stable_mosaic.version = 11 : i64} {
  func.func @decoder_step_kernel(%arg0: i32, %arg1: i32, %arg2: memref<1x16x64xf32, #tpu.memory_space<vmem>>, %arg3: memref<1x16x8x128xbf16, #tpu.memory_space<vmem>>, %arg4: memref<1x16x128xf32, #tpu.memory_space<vmem>>, %arg5: memref<1x16x128xf32, #tpu.memory_space<vmem>>, %arg6: memref<1x16x128xf32, #tpu.memory_space<vmem>>, %arg7: memref<1x64x512xbf16, #tpu.memory_space<vmem>>, %arg8: memref<1x256x512xbf16, #tpu.memory_space<vmem>>, %arg9: memref<1x1x512xf32, #tpu.memory_space<vmem>>, %arg10: memref<1x256x128xbf16, #tpu.memory_space<vmem>>, %arg11: memref<1x1x128xf32, #tpu.memory_space<vmem>>, %arg12: memref<1x128x256xbf16, #tpu.memory_space<vmem>>, %arg13: memref<1x1x256xf32, #tpu.memory_space<vmem>>, %arg14: memref<1x16x256xf32, #tpu.memory_space<vmem>>, %arg15: memref<1x16x1xf32, #tpu.memory_space<vmem>>, %arg16: memref<1x16x8xf32, #tpu.memory_space<vmem>>, %arg17: memref<1x16x128xf32, #tpu.memory_space<vmem>>, %arg18: memref<1x16x128xf32, #tpu.memory_space<vmem>>, %arg19: memref<1x16x128xf32, #tpu.memory_space<vmem>>, %arg20: memref<16x128xbf16, #tpu.memory_space<vmem>>, %arg21: memref<16x1xf32, #tpu.memory_space<vmem>>, %arg22: memref<16x1xf32, #tpu.memory_space<vmem>>) attributes {dimension_semantics = [#tpu.dimension_semantics<parallel>, #tpu.dimension_semantics<arbitrary>], iteration_bounds = array<i64: 2, 2>, scalar_prefetch = 0 : i64, scratch_operands = 3 : i64, tpu.core_type = #tpu.core_type<tc>, window_params = [{transform_indices = @transform_0, window_bounds = array<i64: 1, 16, 64>}, {transform_indices = @transform_1, window_bounds = array<i64: 1, 16, 8, 128>}, {transform_indices = @transform_2, window_bounds = array<i64: 1, 16, 128>}, {transform_indices = @transform_3, window_bounds = array<i64: 1, 16, 128>}, {transform_indices = @transform_4, window_bounds = array<i64: 1, 16, 128>}, {transform_indices = @transform_5, window_bounds = array<i64: 1, 64, 512>}, {transform_indices = @transform_6, window_bounds = array<i64: 1, 256, 512>}, {transform_indices = @transform_7, window_bounds = array<i64: 1, 1, 512>}, {transform_indices = @transform_8, window_bounds = array<i64: 1, 256, 128>}, {transform_indices = @transform_9, window_bounds = array<i64: 1, 1, 128>}, {transform_indices = @transform_10, window_bounds = array<i64: 1, 128, 256>}, {transform_indices = @transform_11, window_bounds = array<i64: 1, 1, 256>}, {transform_indices = @transform_12, window_bounds = array<i64: 1, 16, 256>}, {transform_indices = @transform_13, window_bounds = array<i64: 1, 16, 1>}, {transform_indices = @transform_14, window_bounds = array<i64: 1, 16, 8>}, {transform_indices = @transform_15, window_bounds = array<i64: 1, 16, 128>}, {transform_indices = @transform_16, window_bounds = array<i64: 1, 16, 128>}, {transform_indices = @transform_17, window_bounds = array<i64: 1, 16, 128>}]} {
    %c0_i32 = arith.constant 0 : i32
    %0 = arith.cmpi eq, %arg1, %c0_i32 : i32
    %1 = arith.extui %0 : i1 to i32
    %c0_i32_0 = arith.constant 0 : i32
    %2 = arith.cmpi ne, %1, %c0_i32_0 : i32
    scf.if %2 {
      %c0_24 = arith.constant 0 : index
      %c0_25 = arith.constant 0 : index
      %c0_26 = arith.constant 0 : index
      %34 = vector.load %arg2[%c0_24, %c0_25, %c0_26] : memref<1x16x64xf32, #tpu.memory_space<vmem>>, vector<1x16x64xf32>
      %35 = vector.shape_cast %34 : vector<1x16x64xf32> to vector<16x64xf32>
      %c0_27 = arith.constant 0 : index
      %c0_28 = arith.constant 0 : index
      %c0_29 = arith.constant 0 : index
      %36 = vector.load %arg4[%c0_27, %c0_28, %c0_29] : memref<1x16x128xf32, #tpu.memory_space<vmem>>, vector<1x16x128xf32>
      %37 = vector.shape_cast %36 : vector<1x16x128xf32> to vector<16x128xf32>
      %c0_30 = arith.constant 0 : index
      %c0_31 = arith.constant 0 : index
      %c0_32 = arith.constant 0 : index
      %38 = vector.load %arg5[%c0_30, %c0_31, %c0_32] : memref<1x16x128xf32, #tpu.memory_space<vmem>>, vector<1x16x128xf32>
      %39 = vector.shape_cast %38 : vector<1x16x128xf32> to vector<16x128xf32>
      %c0_33 = arith.constant 0 : index
      %c0_34 = arith.constant 0 : index
      %c0_35 = arith.constant 0 : index
      %40 = vector.load %arg6[%c0_33, %c0_34, %c0_35] : memref<1x16x128xf32, #tpu.memory_space<vmem>>, vector<1x16x128xf32>
      %41 = vector.shape_cast %40 : vector<1x16x128xf32> to vector<16x128xf32>
      %c0_36 = arith.constant 0 : index
      %c0_37 = arith.constant 0 : index
      %c0_38 = arith.constant 0 : index
      %c0_39 = arith.constant 0 : index
      %42 = vector.load %arg3[%c0_36, %c0_37, %c0_38, %c0_39] : memref<1x16x8x128xbf16, #tpu.memory_space<vmem>>, vector<1x16x8x128xbf16>
      %43 = vector.shape_cast %42 : vector<1x16x8x128xbf16> to vector<16x8x128xbf16>
      %44 = arith.extf %43 : vector<16x8x128xbf16> to vector<16x8x128xf32>
      %45 = tpu.concatenate %41, %37 in 1 : vector<16x128xf32>, vector<16x128xf32> -> vector<16x256xf32>
      %46 = arith.truncf %45 : vector<16x256xf32> to vector<16x256xbf16>
      %47 = arith.truncf %35 : vector<16x64xf32> to vector<16x64xbf16>
      %c0_40 = arith.constant 0 : index
      %c0_41 = arith.constant 0 : index
      %c0_42 = arith.constant 0 : index
      %48 = vector.load %arg7[%c0_40, %c0_41, %c0_42] : memref<1x64x512xbf16, #tpu.memory_space<vmem>>, vector<1x64x512xbf16>
      %49 = vector.shape_cast %48 : vector<1x64x512xbf16> to vector<64x512xbf16>
      %cst_43 = arith.constant dense<0.000000e+00> : vector<16x512xf32>
      %50 = tpu.matmul %47, %49, %cst_43 {dimension_numbers = #tpu.dot_dimension_numbers<[1], [0], [0], [1], [0, 0, 1, 1], [], []>} : vector<16x64xbf16>, vector<64x512xbf16>, vector<16x512xf32> -> vector<16x512xf32>
      %c0_44 = arith.constant 0 : index
      %c0_45 = arith.constant 0 : index
      %c0_46 = arith.constant 0 : index
      %51 = vector.load %arg8[%c0_44, %c0_45, %c0_46] : memref<1x256x512xbf16, #tpu.memory_space<vmem>>, vector<1x256x512xbf16>
      %52 = vector.shape_cast %51 : vector<1x256x512xbf16> to vector<256x512xbf16>
      %cst_47 = arith.constant dense<0.000000e+00> : vector<16x512xf32>
      %53 = tpu.matmul %46, %52, %cst_47 {dimension_numbers = #tpu.dot_dimension_numbers<[1], [0], [0], [1], [0, 0, 1, 1], [], []>} : vector<16x256xbf16>, vector<256x512xbf16>, vector<16x512xf32> -> vector<16x512xf32>
      %54 = arith.addf %50, %53 : vector<16x512xf32>
      %c0_48 = arith.constant 0 : index
      %c0_49 = arith.constant 0 : index
      %c0_50 = arith.constant 0 : index
      %55 = vector.load %arg9[%c0_48, %c0_49, %c0_50] : memref<1x1x512xf32, #tpu.memory_space<vmem>>, vector<1x1x512xf32>
      %56 = vector.shape_cast %55 : vector<1x1x512xf32> to vector<1x512xf32>
      %57 = vector.broadcast %56 : vector<1x512xf32> to vector<16x512xf32>
      %58 = arith.addf %54, %57 : vector<16x512xf32>
      %59 = vector.extract_strided_slice %58 {offsets = [0, 0], sizes = [16, 384], strides = [1, 1]} : vector<16x512xf32> to vector<16x384xf32>
      %60 = arith.negf %59 : vector<16x384xf32>
      %61 = math.exp %60 : vector<16x384xf32>
      %cst_51 = arith.constant 1.000000e+00 : f32
      %62 = vector.broadcast %cst_51 : f32 to vector<16x384xf32>
      %63 = arith.addf %62, %61 : vector<16x384xf32>
      %64 = arith.divf %62, %63 : vector<16x384xf32>
      %65 = vector.extract_strided_slice %64 {offsets = [0, 0], sizes = [16, 128], strides = [1, 1]} : vector<16x384xf32> to vector<16x128xf32>
      %66 = vector.extract_strided_slice %64 {offsets = [0, 128], sizes = [16, 128], strides = [1, 1]} : vector<16x384xf32> to vector<16x128xf32>
      %67 = vector.extract_strided_slice %64 {offsets = [0, 256], sizes = [16, 128], strides = [1, 1]} : vector<16x384xf32> to vector<16x128xf32>
      %68 = vector.extract_strided_slice %58 {offsets = [0, 384], sizes = [16, 128], strides = [1, 1]} : vector<16x512xf32> to vector<16x128xf32>
      %69 = math.tanh %68 : vector<16x128xf32>
      %70 = arith.mulf %66, %39 : vector<16x128xf32>
      %71 = arith.mulf %65, %69 : vector<16x128xf32>
      %72 = arith.addf %70, %71 : vector<16x128xf32>
      %73 = math.tanh %72 : vector<16x128xf32>
      %74 = arith.mulf %67, %73 : vector<16x128xf32>
      %75 = vector.shape_cast %74 : vector<16x128xf32> to vector<16x1x128xf32>
      %76 = vector.broadcast %75 : vector<16x1x128xf32> to vector<16x8x128xf32>
      %77 = arith.mulf %76, %44 : vector<16x8x128xf32>
      %cst_52 = arith.constant dense<0.000000e+00> : vector<16x8xf32>
      %78 = vector.multi_reduction <add>, %77, %cst_52 [2] : vector<16x8x128xf32> to vector<16x8xf32>
      %cst_53 = arith.constant dense<0xFF800000> : vector<16xf32>
      %79 = vector.multi_reduction <maximumf>, %78, %cst_53 [1] : vector<16x8xf32> to vector<16xf32>
      %80 = vector.shape_cast %79 : vector<16xf32> to vector<16x1xf32>
      %81 = vector.broadcast %80 : vector<16x1xf32> to vector<16x8xf32>
      %82 = arith.subf %78, %81 : vector<16x8xf32>
      %83 = math.exp %82 : vector<16x8xf32>
      %cst_54 = arith.constant dense<0.000000e+00> : vector<16xf32>
      %84 = vector.multi_reduction <add>, %83, %cst_54 [1] : vector<16x8xf32> to vector<16xf32>
      %85 = vector.shape_cast %84 : vector<16xf32> to vector<16x1xf32>
      %86 = vector.broadcast %85 : vector<16x1xf32> to vector<16x8xf32>
      %87 = arith.divf %83, %86 : vector<16x8xf32>
      %88 = vector.shape_cast %87 : vector<16x8xf32> to vector<16x8x1xf32>
      %89 = vector.broadcast %88 : vector<16x8x1xf32> to vector<16x8x128xf32>
      %90 = arith.mulf %89, %44 : vector<16x8x128xf32>
      %cst_55 = arith.constant dense<0.000000e+00> : vector<16x128xf32>
      %91 = vector.multi_reduction <add>, %90, %cst_55 [1] : vector<16x8x128xf32> to vector<16x128xf32>
      %92 = tpu.concatenate %74, %91 in 1 : vector<16x128xf32>, vector<16x128xf32> -> vector<16x256xf32>
      %93 = arith.truncf %92 : vector<16x256xf32> to vector<16x256xbf16>
      %c0_56 = arith.constant 0 : index
      %c0_57 = arith.constant 0 : index
      %c0_58 = arith.constant 0 : index
      %94 = vector.load %arg10[%c0_56, %c0_57, %c0_58] : memref<1x256x128xbf16, #tpu.memory_space<vmem>>, vector<1x256x128xbf16>
      %95 = vector.shape_cast %94 : vector<1x256x128xbf16> to vector<256x128xbf16>
      %cst_59 = arith.constant dense<0.000000e+00> : vector<16x128xf32>
      %96 = tpu.matmul %93, %95, %cst_59 {dimension_numbers = #tpu.dot_dimension_numbers<[1], [0], [0], [1], [0, 0, 1, 1], [], []>} : vector<16x256xbf16>, vector<256x128xbf16>, vector<16x128xf32> -> vector<16x128xf32>
      %c0_60 = arith.constant 0 : index
      %c0_61 = arith.constant 0 : index
      %c0_62 = arith.constant 0 : index
      %97 = vector.load %arg11[%c0_60, %c0_61, %c0_62] : memref<1x1x128xf32, #tpu.memory_space<vmem>>, vector<1x1x128xf32>
      %98 = vector.shape_cast %97 : vector<1x1x128xf32> to vector<1x128xf32>
      %99 = vector.broadcast %98 : vector<1x128xf32> to vector<16x128xf32>
      %100 = arith.addf %96, %99 : vector<16x128xf32>
      %101 = math.tanh %100 : vector<16x128xf32>
      %c0_63 = arith.constant 0 : index
      %c0_64 = arith.constant 0 : index
      %c0_65 = arith.constant 0 : index
      %102 = vector.load %arg16[%c0_63, %c0_64, %c0_65] : memref<1x16x8xf32, #tpu.memory_space<vmem>>, vector<1x16x8xf32>
      %103 = vector.shape_cast %102 : vector<1x16x8xf32> to vector<16x8xf32>
      %104 = vector.shape_cast %87 : vector<16x8xf32> to vector<1x16x8xf32>
      tpu.vector_store %arg16[%c0_63, %c0_64, %c0_65], %104 {strides = array<i32>} : memref<1x16x8xf32, #tpu.memory_space<vmem>>, vector<1x16x8xf32>,
      %c0_66 = arith.constant 0 : index
      %c0_67 = arith.constant 0 : index
      %c0_68 = arith.constant 0 : index
      %105 = vector.load %arg17[%c0_66, %c0_67, %c0_68] : memref<1x16x128xf32, #tpu.memory_space<vmem>>, vector<1x16x128xf32>
      %106 = vector.shape_cast %105 : vector<1x16x128xf32> to vector<16x128xf32>
      %107 = vector.shape_cast %74 : vector<16x128xf32> to vector<1x16x128xf32>
      tpu.vector_store %arg17[%c0_66, %c0_67, %c0_68], %107 {strides = array<i32>} : memref<1x16x128xf32, #tpu.memory_space<vmem>>, vector<1x16x128xf32>,
      %c0_69 = arith.constant 0 : index
      %c0_70 = arith.constant 0 : index
      %c0_71 = arith.constant 0 : index
      %108 = vector.load %arg18[%c0_69, %c0_70, %c0_71] : memref<1x16x128xf32, #tpu.memory_space<vmem>>, vector<1x16x128xf32>
      %109 = vector.shape_cast %108 : vector<1x16x128xf32> to vector<16x128xf32>
      %110 = vector.shape_cast %72 : vector<16x128xf32> to vector<1x16x128xf32>
      tpu.vector_store %arg18[%c0_69, %c0_70, %c0_71], %110 {strides = array<i32>} : memref<1x16x128xf32, #tpu.memory_space<vmem>>, vector<1x16x128xf32>,
      %c0_72 = arith.constant 0 : index
      %c0_73 = arith.constant 0 : index
      %c0_74 = arith.constant 0 : index
      %111 = vector.load %arg19[%c0_72, %c0_73, %c0_74] : memref<1x16x128xf32, #tpu.memory_space<vmem>>, vector<1x16x128xf32>
      %112 = vector.shape_cast %111 : vector<1x16x128xf32> to vector<16x128xf32>
      %113 = vector.shape_cast %101 : vector<16x128xf32> to vector<1x16x128xf32>
      tpu.vector_store %arg19[%c0_72, %c0_73, %c0_74], %113 {strides = array<i32>} : memref<1x16x128xf32, #tpu.memory_space<vmem>>, vector<1x16x128xf32>,
      %114 = arith.truncf %101 : vector<16x128xf32> to vector<16x128xbf16>
      %c0_75 = arith.constant 0 : index
      %c0_76 = arith.constant 0 : index
      %115 = vector.load %arg20[%c0_75, %c0_76] : memref<16x128xbf16, #tpu.memory_space<vmem>>, vector<16x128xbf16>
      tpu.vector_store %arg20[%c0_75, %c0_76], %114 {strides = array<i32>} : memref<16x128xbf16, #tpu.memory_space<vmem>>, vector<16x128xbf16>,
      %cst_77 = arith.constant 0xFF800000 : f32
      %116 = vector.broadcast %cst_77 : f32 to vector<16x1xf32>
      %c0_78 = arith.constant 0 : index
      %c0_79 = arith.constant 0 : index
      %117 = vector.load %arg21[%c0_78, %c0_79] : memref<16x1xf32, #tpu.memory_space<vmem>>, vector<16x1xf32>
      tpu.vector_store %arg21[%c0_78, %c0_79], %116 {strides = array<i32>} : memref<16x1xf32, #tpu.memory_space<vmem>>, vector<16x1xf32>,
      %cst_80 = arith.constant 0.000000e+00 : f32
      %118 = vector.broadcast %cst_80 : f32 to vector<16x1xf32>
      %c0_81 = arith.constant 0 : index
      %c0_82 = arith.constant 0 : index
      %119 = vector.load %arg22[%c0_81, %c0_82] : memref<16x1xf32, #tpu.memory_space<vmem>>, vector<16x1xf32>
      tpu.vector_store %arg22[%c0_81, %c0_82], %118 {strides = array<i32>} : memref<16x1xf32, #tpu.memory_space<vmem>>, vector<16x1xf32>,
    } else {
    }
    %c0 = arith.constant 0 : index
    %c0_1 = arith.constant 0 : index
    %3 = vector.load %arg20[%c0, %c0_1] : memref<16x128xbf16, #tpu.memory_space<vmem>>, vector<16x128xbf16>
    %c0_2 = arith.constant 0 : index
    %c0_3 = arith.constant 0 : index
    %c0_4 = arith.constant 0 : index
    %4 = vector.load %arg12[%c0_2, %c0_3, %c0_4] : memref<1x128x256xbf16, #tpu.memory_space<vmem>>, vector<1x128x256xbf16>
    %5 = vector.shape_cast %4 : vector<1x128x256xbf16> to vector<128x256xbf16>
    %cst = arith.constant dense<0.000000e+00> : vector<16x256xf32>
    %6 = tpu.matmul %3, %5, %cst {dimension_numbers = #tpu.dot_dimension_numbers<[1], [0], [0], [1], [0, 0, 1, 1], [], []>} : vector<16x128xbf16>, vector<128x256xbf16>, vector<16x256xf32> -> vector<16x256xf32>
    %c0_5 = arith.constant 0 : index
    %c0_6 = arith.constant 0 : index
    %c0_7 = arith.constant 0 : index
    %7 = vector.load %arg13[%c0_5, %c0_6, %c0_7] : memref<1x1x256xf32, #tpu.memory_space<vmem>>, vector<1x1x256xf32>
    %8 = vector.shape_cast %7 : vector<1x1x256xf32> to vector<1x256xf32>
    %9 = vector.broadcast %8 : vector<1x256xf32> to vector<16x256xf32>
    %10 = arith.addf %6, %9 : vector<16x256xf32>
    %c0_8 = arith.constant 0 : index
    %c0_9 = arith.constant 0 : index
    %c0_10 = arith.constant 0 : index
    %11 = vector.load %arg14[%c0_8, %c0_9, %c0_10] : memref<1x16x256xf32, #tpu.memory_space<vmem>>, vector<1x16x256xf32>
    %12 = vector.shape_cast %11 : vector<1x16x256xf32> to vector<16x256xf32>
    %13 = vector.shape_cast %10 : vector<16x256xf32> to vector<1x16x256xf32>
    tpu.vector_store %arg14[%c0_8, %c0_9, %c0_10], %13 {strides = array<i32>} : memref<1x16x256xf32, #tpu.memory_space<vmem>>, vector<1x16x256xf32>,
    %cst_11 = arith.constant dense<0xFF800000> : vector<16xf32>
    %14 = vector.multi_reduction <maximumf>, %10, %cst_11 [1] : vector<16x256xf32> to vector<16xf32>
    %15 = vector.shape_cast %14 : vector<16xf32> to vector<16x1xf32>
    %c0_12 = arith.constant 0 : index
    %c0_13 = arith.constant 0 : index
    %16 = vector.load %arg21[%c0_12, %c0_13] : memref<16x1xf32, #tpu.memory_space<vmem>>, vector<16x1xf32>
    %17 = arith.maximumf %16, %15 : vector<16x1xf32>
    %c0_14 = arith.constant 0 : index
    %c0_15 = arith.constant 0 : index
    %18 = vector.load %arg22[%c0_14, %c0_15] : memref<16x1xf32, #tpu.memory_space<vmem>>, vector<16x1xf32>
    %c0_16 = arith.constant 0 : index
    %c0_17 = arith.constant 0 : index
    %19 = vector.load %arg21[%c0_16, %c0_17] : memref<16x1xf32, #tpu.memory_space<vmem>>, vector<16x1xf32>
    %20 = arith.subf %19, %17 : vector<16x1xf32>
    %21 = math.exp %20 : vector<16x1xf32>
    %22 = arith.mulf %18, %21 : vector<16x1xf32>
    %23 = vector.broadcast %17 : vector<16x1xf32> to vector<16x256xf32>
    %24 = arith.subf %10, %23 : vector<16x256xf32>
    %25 = math.exp %24 : vector<16x256xf32>
    %cst_18 = arith.constant dense<0.000000e+00> : vector<16xf32>
    %26 = vector.multi_reduction <add>, %25, %cst_18 [1] : vector<16x256xf32> to vector<16xf32>
    %27 = vector.shape_cast %26 : vector<16xf32> to vector<16x1xf32>
    %28 = arith.addf %22, %27 : vector<16x1xf32>
    %c0_19 = arith.constant 0 : index
    %c0_20 = arith.constant 0 : index
    %29 = vector.load %arg22[%c0_19, %c0_20] : memref<16x1xf32, #tpu.memory_space<vmem>>, vector<16x1xf32>
    tpu.vector_store %arg22[%c0_19, %c0_20], %28 {strides = array<i32>} : memref<16x1xf32, #tpu.memory_space<vmem>>, vector<16x1xf32>,
    %c0_21 = arith.constant 0 : index
    %c0_22 = arith.constant 0 : index
    %30 = vector.load %arg21[%c0_21, %c0_22] : memref<16x1xf32, #tpu.memory_space<vmem>>, vector<16x1xf32>
    tpu.vector_store %arg21[%c0_21, %c0_22], %17 {strides = array<i32>} : memref<16x1xf32, #tpu.memory_space<vmem>>, vector<16x1xf32>,
    %c1_i32 = arith.constant 1 : i32
    %31 = arith.cmpi eq, %arg1, %c1_i32 : i32
    %32 = arith.extui %31 : i1 to i32
    %c0_i32_23 = arith.constant 0 : i32
    %33 = arith.cmpi ne, %32, %c0_i32_23 : i32
    scf.if %33 {
      %c0_24 = arith.constant 0 : index
      %c0_25 = arith.constant 0 : index
      %34 = vector.load %arg21[%c0_24, %c0_25] : memref<16x1xf32, #tpu.memory_space<vmem>>, vector<16x1xf32>
      %c0_26 = arith.constant 0 : index
      %c0_27 = arith.constant 0 : index
      %35 = vector.load %arg22[%c0_26, %c0_27] : memref<16x1xf32, #tpu.memory_space<vmem>>, vector<16x1xf32>
      %36 = math.log %35 : vector<16x1xf32>
      %37 = arith.addf %34, %36 : vector<16x1xf32>
      %c0_28 = arith.constant 0 : index
      %c0_29 = arith.constant 0 : index
      %c0_30 = arith.constant 0 : index
      %38 = vector.load %arg15[%c0_28, %c0_29, %c0_30] : memref<1x16x1xf32, #tpu.memory_space<vmem>>, vector<1x16x1xf32>
      %39 = vector.shape_cast %38 : vector<1x16x1xf32> to vector<16x1xf32>
      %40 = vector.shape_cast %37 : vector<16x1xf32> to vector<1x16x1xf32>
      tpu.vector_store %arg15[%c0_28, %c0_29, %c0_30], %40 {strides = array<i32>} : memref<1x16x1xf32, #tpu.memory_space<vmem>>, vector<1x16x1xf32>,
    } else {
    }
    return
  }
  func.func @transform_0(%arg0: i32, %arg1: i32) -> (i32, i32, i32) {
    %c0_i32 = arith.constant 0 : i32
    %c0_i32_0 = arith.constant 0 : i32
    %c0_i32_1 = arith.constant 0 : i32
    return %arg0, %c0_i32, %c0_i32_0 : i32, i32, i32
  }
  func.func @transform_1(%arg0: i32, %arg1: i32) -> (i32, i32, i32, i32) {
    %c0_i32 = arith.constant 0 : i32
    %c0_i32_0 = arith.constant 0 : i32
    %c0_i32_1 = arith.constant 0 : i32
    %c0_i32_2 = arith.constant 0 : i32
    return %arg0, %c0_i32, %c0_i32_0, %c0_i32_1 : i32, i32, i32, i32
  }
  func.func @transform_2(%arg0: i32, %arg1: i32) -> (i32, i32, i32) {
    %c0_i32 = arith.constant 0 : i32
    %c0_i32_0 = arith.constant 0 : i32
    %c0_i32_1 = arith.constant 0 : i32
    return %arg0, %c0_i32, %c0_i32_0 : i32, i32, i32
  }
  func.func @transform_3(%arg0: i32, %arg1: i32) -> (i32, i32, i32) {
    %c0_i32 = arith.constant 0 : i32
    %c0_i32_0 = arith.constant 0 : i32
    %c0_i32_1 = arith.constant 0 : i32
    return %arg0, %c0_i32, %c0_i32_0 : i32, i32, i32
  }
  func.func @transform_4(%arg0: i32, %arg1: i32) -> (i32, i32, i32) {
    %c0_i32 = arith.constant 0 : i32
    %c0_i32_0 = arith.constant 0 : i32
    %c0_i32_1 = arith.constant 0 : i32
    return %arg0, %c0_i32, %c0_i32_0 : i32, i32, i32
  }
  func.func @transform_5(%arg0: i32, %arg1: i32) -> (i32, i32, i32) {
    %c0_i32 = arith.constant 0 : i32
    %c0_i32_0 = arith.constant 0 : i32
    %c0_i32_1 = arith.constant 0 : i32
    return %arg0, %c0_i32, %c0_i32_0 : i32, i32, i32
  }
  func.func @transform_6(%arg0: i32, %arg1: i32) -> (i32, i32, i32) {
    %c0_i32 = arith.constant 0 : i32
    %c0_i32_0 = arith.constant 0 : i32
    %c0_i32_1 = arith.constant 0 : i32
    return %arg0, %c0_i32, %c0_i32_0 : i32, i32, i32
  }
  func.func @transform_7(%arg0: i32, %arg1: i32) -> (i32, i32, i32) {
    %c0_i32 = arith.constant 0 : i32
    %c0_i32_0 = arith.constant 0 : i32
    %c0_i32_1 = arith.constant 0 : i32
    return %arg0, %c0_i32, %c0_i32_0 : i32, i32, i32
  }
  func.func @transform_8(%arg0: i32, %arg1: i32) -> (i32, i32, i32) {
    %c0_i32 = arith.constant 0 : i32
    %c0_i32_0 = arith.constant 0 : i32
    %c0_i32_1 = arith.constant 0 : i32
    return %arg0, %c0_i32, %c0_i32_0 : i32, i32, i32
  }
  func.func @transform_9(%arg0: i32, %arg1: i32) -> (i32, i32, i32) {
    %c0_i32 = arith.constant 0 : i32
    %c0_i32_0 = arith.constant 0 : i32
    %c0_i32_1 = arith.constant 0 : i32
    return %arg0, %c0_i32, %c0_i32_0 : i32, i32, i32
  }
  func.func @transform_10(%arg0: i32, %arg1: i32) -> (i32, i32, i32) {
    %c0_i32 = arith.constant 0 : i32
    %c0_i32_0 = arith.constant 0 : i32
    return %arg0, %c0_i32, %arg1 : i32, i32, i32
  }
  func.func @transform_11(%arg0: i32, %arg1: i32) -> (i32, i32, i32) {
    %c0_i32 = arith.constant 0 : i32
    %c0_i32_0 = arith.constant 0 : i32
    return %arg0, %c0_i32, %arg1 : i32, i32, i32
  }
  func.func @transform_12(%arg0: i32, %arg1: i32) -> (i32, i32, i32) {
    %c0_i32 = arith.constant 0 : i32
    %c0_i32_0 = arith.constant 0 : i32
    return %arg0, %c0_i32, %arg1 : i32, i32, i32
  }
  func.func @transform_13(%arg0: i32, %arg1: i32) -> (i32, i32, i32) {
    %c0_i32 = arith.constant 0 : i32
    %c0_i32_0 = arith.constant 0 : i32
    %c0_i32_1 = arith.constant 0 : i32
    return %arg0, %c0_i32, %c0_i32_0 : i32, i32, i32
  }
  func.func @transform_14(%arg0: i32, %arg1: i32) -> (i32, i32, i32) {
    %c0_i32 = arith.constant 0 : i32
    %c0_i32_0 = arith.constant 0 : i32
    %c0_i32_1 = arith.constant 0 : i32
    return %arg0, %c0_i32, %c0_i32_0 : i32, i32, i32
  }
  func.func @transform_15(%arg0: i32, %arg1: i32) -> (i32, i32, i32) {
    %c0_i32 = arith.constant 0 : i32
    %c0_i32_0 = arith.constant 0 : i32
    %c0_i32_1 = arith.constant 0 : i32
    return %arg0, %c0_i32, %c0_i32_0 : i32, i32, i32
  }
  func.func @transform_16(%arg0: i32, %arg1: i32) -> (i32, i32, i32) {
    %c0_i32 = arith.constant 0 : i32
    %c0_i32_0 = arith.constant 0 : i32
    %c0_i32_1 = arith.constant 0 : i32
    return %arg0, %c0_i32, %c0_i32_0 : i32, i32, i32
  }
  func.func @transform_17(%arg0: i32, %arg1: i32) -> (i32, i32, i32) {
    %c0_i32 = arith.constant 0 : i32
    %c0_i32_0 = arith.constant 0 : i32
    %c0_i32_1 = arith.constant 0 : i32
    return %arg0, %c0_i32, %c0_i32_0 : i32, i32, i32
  }
}

</mosaic_0001>

<bundles_post_ra>
// kernel: decoder_batched_step_ensemble_forward.1
= control target key start
LH: loop header
LB: loop body
LE: loop exit
PB: predicated region body
PF: predicated region fallthrough
CT: control target
= control target key end

     0   :  { %s5411_s0 = inlined_call_operand.vmem [shape: f32[2,16,64], index: 0, kind: input, shape index: {}]   ;;  %s5412_s1 = inlined_call_operand.vmem [shape: bf16[2,16,8,128], index: 1, kind: input, shape index: {}]   ;;  %s5413_s2 = inlined_call_operand.vmem [shape: f32[2,16,128], index: 2, kind: input, shape index: {}]   ;;  %s5414_s3 = inlined_call_operand.vmem [shape: f32[2,16,128], index: 3, kind: input, shape index: {}]   ;;  %s5415_s4 = inlined_call_operand.vmem [shape: f32[2,16,128], index: 4, kind: input, shape index: {}]   ;;  %s5416_s5 = inlined_call_operand.vmem [shape: bf16[2,64,512], index: 5, kind: input, shape index: {}]   ;;  %s5417_s6 = inlined_call_operand.vmem [shape: bf16[2,256,512], index: 6, kind: input, shape index: {}]   ;;  %s5418_s7 = inlined_call_operand.vmem [shape: f32[2,1,512], index: 7, kind: input, shape index: {}]   ;;  %s5419_s8 = inlined_call_operand.hbm [shape: bf16[2,256,128], index: 8, kind: input, shape index: {}]   ;;  %s5420_s9 = inlined_call_operand.vmem [shape: f32[2,1,128], index: 9, kind: input, shape index: {}]   ;;  %s5421_s10 = inlined_call_operand.vmem [shape: bf16[2,128,512], index: 10, kind: input, shape index: {}]   ;;  %s5422_s11 = inlined_call_operand.vmem [shape: f32[2,1,512], index: 11, kind: input, shape index: {}]   ;;  %s5423_s12 = inlined_call_operand.vmem [shape: f32[2,16,512], index: 12, kind: output, shape index: {0}]   ;;  %s5424_s13 = inlined_call_operand.vmem [shape: f32[2,16,1], index: 13, kind: output, shape index: {1}]   ;;  %s5425_s14 = inlined_call_operand.vmem [shape: f32[2,16,8], index: 14, kind: output, shape index: {2}]   ;;  %s5426_s15 = inlined_call_operand.vmem [shape: f32[2,16,128], index: 15, kind: output, shape index: {3}]   ;;  %s5427_s16 = inlined_call_operand.vmem [shape: f32[2,16,128], index: 16, kind: output, shape index: {4}]   ;;  %s5428_s17 = inlined_call_operand.vmem [shape: f32[2,16,128], index: 17, kind: output, shape index: {5}]  }
   0x1   :  { %5456 = sst [smem:[#allocation26_spill]] %s5411_s0 }
   0x2   :  { %5457 = sst [smem:[#allocation27_spill]] %s5412_s1 }
   0x3   :  { %5458 = sst [smem:[#allocation28_spill]] %s5413_s2 }
   0x4   :  { %5459 = sst [smem:[#allocation29_spill]] %s5414_s3 }
   0x5   :  { %5460 = sst [smem:[#allocation30_spill]] %s5415_s4 }
   0x6   :  { %5461 = sst [smem:[#allocation31_spill]] %s5416_s5 }
   0x7   :  { %5462 = sst [smem:[#allocation32_spill]] %s5417_s6 }
   0x8   :  { %5463 = sst [smem:[#allocation33_spill]] %s5418_s7 }
   0x9   :  { %5464 = sst [smem:[#allocation34_spill]] %s5419_s8 }
   0xa   :  { %5465 = sst [smem:[#allocation35_spill]] %s5420_s9 }
   0xb   :  { %5466 = sst [smem:[#allocation36_spill]] %s5421_s10 }
   0xc   :  { %5467 = sst [smem:[#allocation37_spill]] %s5422_s11 }
   0xd   :  { %5468 = sst [smem:[#allocation38_spill]] %s5423_s12 }
   0xe   :  { %5469 = sst [smem:[#allocation39_spill]] %s5424_s13 }
   0xf   :  { %5470 = sst [smem:[#allocation40_spill]] %s5425_s14 }
  0x10   :  { %5471 = sst [smem:[#allocation41_spill]] %s5426_s15 }
  0x11   :  { %5472 = sst [smem:[#allocation42_spill]] %s5427_s16 }
  0x12   :  { %5473 = sst [smem:[#allocation43_spill]] %s5428_s17 }
  0x13   :  { %23 = vsyncpa [#allocation6], 0 }
  0x14   :  { %25 = vsyncpa [#allocation6 + $0x1], 0  ;;  %s4454_s24 = smov 0   ;;  %s4456_s25 = smov 0  }
  0x15   :  { %s4458_s26 = smov 0   ;;  %s4460_s27 = smov 0  }
  0x16   :  { %s4462_s28 = smov 0   ;;  %s4464_s29 = smov 0  }
  0x17   :  { %s4466_s0 = smov 0   ;;  %s4468_s30 = smov 0  }
  0x18   :  { %s4470_s18 = smov 0   ;;  %s4472_s19 = smov 0  }
  0x19 LB: > { %5474 = sst [smem:[#allocation10_spill]] %s4322_s25  ;;  %s3622_s1 = sadd.s32 4294967295, %s4354_s19   ;;  %s4354_s19 = sphi %s4472_s19, %s31_s19   ;;  %s4350_s18 = sphi %s4470_s18, %s5545_s18   ;;  %s4346_s30 = sphi %s4468_s30, %s5544_s30   ;;  %s4342_s0 = sphi %s4466_s0, %s5543_s0   ;;  %s4338_s29 = sphi %s4464_s29, %s5542_s29   ;;  %s4334_s28 = sphi %s4462_s28, %s5541_s28   ;;  %s4330_s27 = sphi %s4460_s27, %s5540_s27   ;;  %s4326_s26 = sphi %s4458_s26, %s5539_s26   ;;  %s4322_s25 = sphi %s4456_s25, %s5538_s25   ;;  %s4318_s24 = sphi %s4454_s24, %s5537_s24  }
  0x1a   : > { %5475 = sst [smem:[#allocation11_spill]] %s4330_s27  ;;  %s40_s20 = sadd.s32 1, %s4346_s30 }
  0x1b   : > { %5476 = sst [smem:[#allocation12_spill]] %s4334_s28  ;;  %p41_p0 = scmp.ge.s32.totalorder %s40_s20, 2 }
  0x1c   : > { %5477 = sst [smem:[#allocation13_spill]] %s4342_s0  ;;  %s43_s21 = sadd.s32 1, %s4350_s18 }
  0x1d   : > { %5478 = sst [smem:[#allocation14_spill]] %s4346_s30  ;;  %s258_s22 = sadd.s32 1, %s4334_s28 }
  0x1e   : > { %5479 = sst [smem:[#allocation15_spill]] %s4350_s18  ;;  %p265_p1 = scmp.ne.s32.totalorder %s4334_s28, %s4330_s27 }
  0x1f   : > { %5480 = sst [smem:[#allocation16_spill]] %s4354_s19  ;;  %s5547_s20 = smov (%p41_p0, %s40_s20), 0 }
  0x20   : > { %5481 = sst [smem:[#allocation17_spill]] %s5547_s20  ;;  %s5549_s21 = smov (!%p41_p0, %s43_s21), %s4350_s18 }
  0x21   : > { %p266_p2 = scmp.eq.s32.totalorder %s4354_s19, 0  ;;  %p271_p3 = scmp.ne.s32.totalorder %s4330_s27, %s4326_s26 }
  0x22   : > { %p45_p4 = scmp.ge.s32.totalorder %s5549_s21, 2  ;;  %p272_p5 = scmp.eq.s32.totalorder %s3622_s1, 0 }
  0x23   : > { %p4515_p6 = por %p266_p2, %p265_p1  ;;  %s308_s12 = ssub.s32 %s4346_s30, %s5547_s20 }
  0x24   : > { %s5551_s21 = smov (%p45_p4, %s5549_s21), 0  ;;  %p4523_p7 = por %p272_p5, %p271_p3 }
  0x25   : > { %5483 = sst [smem:[#allocation18_spill]] %s5551_s21  ;;  %s312_s17 = sadd.s32 1, %s4322_s25 }
  0x26   : > { %s5484_s11 = scalar_select %p4523_p7, 1, 0 }
  0x27   : > { %s255_s16 = ssub.s32 %s4350_s18, %s5551_s21  ;;  %p319_p8 = scmp.ne.s32.totalorder %s4322_s25, %s4318_s24 }
  0x28   : > { %p256_p9 = scmp.eq.s32.totalorder %s255_s16, 0  ;;  %s309_s26 = sor.u32 %s308_s12, %s255_s16 }
  0x29   : > { %p310_p10 = scmp.eq.s32.totalorder %s309_s26, 0  ;;  %p4534_p11 = por %p319_p8, %p266_p2 }
  0x2a   : > { %s4539_s14 = scalar_select %p256_p9, %s4334_s28, %s258_s22  }
  0x2b   : > { %s4542_s20 = scalar_select %p310_p10, %s4322_s25, %s312_s17  }
  0x2c   : > { %5486 = sst [smem:[#allocation19_spill]] %s4539_s14  ;;  %p379_p12 = scmp.eq.s32.totalorder %s3622_s1, 3 }
  0x2d   : > { %5487 = sst [smem:[#allocation20_spill]] %s4542_s20  ;;  %p3625_p0 = scmp.ge.s32.totalorder %s4354_s19, 4 }
  0x2e   : > { %p4544_p13 = por %p379_p12, %p319_p8  ;;  %s598_s12 = sand.u32 (!%p3625_p0), 1, %s4334_s28  }
  0x2f   : > { %531 = sbr.rel (%p3625_p0) target bundleno = 96 (0x60), region = 16  ;;  %s3793_s16 = sshll.u32 (!%p3625_p0), %s4350_s18, 11 }
  0x30   : > { %s5488_s13 = scalar_select %p4544_p13, 1, 0 }
  0x31   : > { %s3626_s26 = sshll.u32 (!%p3625_p0), %s598_s12, 7  ;;  %s5490_s8 = sld [smem:[#allocation34_spill]] (!%p3625_p0) }
  0x32   : > { %5489 = sst [smem:[#allocation21_spill]] %s5488_s13  ;;  %s602_s17 = scalar_lea.vmem (!%p3625_p0), [#allocation5], %s3626_s26 }
  0x33   : > { %s609_s1 = sshll.u32 (!%p3625_p0), %s602_s17, 4  ;;  %s4558_s14 = scalar_lea.sflag (!%p3625_p0), [#allocation6], %s598_s12  ;;  %s4556_s1 = int_to_ptr.vmem [resolvable:$true] %s609_s1 }
  0x37   : > { %s4554_s22 = scalar_lea.hbm %s5490_s8, %s3793_s16  ;;  %s4248_s9 = scalar_lea.hbm %s5490_s8, 4096 }
  0x38   : > { %s4244_s20 = scalar_lea.hbm %s4554_s22, 2048  ;;  %p4249_p4 = scmp.lt.u32.totalorder %s4554_s22, %s5490_s8 }
  0x39   : > { %p4245_p1 = scmp.ne.s32.totalorder %s4554_s22, %s4244_s20  ;;  %p4250_p5 = scmp.lt.u32.totalorder %s4248_s9, %s4244_s20 }
  0x3a   : > { %p4252_p9 = scmp.lt.u32.totalorder %s4244_s20, %s4554_s22 }
  0x3b   : > { %p4246_p2 = pnand %p4245_p1, %p4515_p6  ;;  %p4251_p8 = por %p4250_p5, %p4249_p4 }
  0x3d   : > { %p4247_p3 = pneg %p4246_p2  ;;  %p4253_p10 = por %p4252_p9, %p4251_p8 }
  0x3f   : > { %p4254_p12 = pnand %p4253_p10, %p4247_p3 }
  0x41   : > { %4257 = shalt.err (!%p4254_p12)
}
  0x42   : > { %s4258_s12 = scalar_lea.vmem %s4556_s1, 2048  ;;  %s4356_s13 = smov [#allocation5]  }
  0x43   : > { %p4259_p0 = scmp.ne.s32.totalorder %s4556_s1, %s4258_s12  ;;  %s4262_s28 = sshll.u32 %s4356_s13, 4  ;;  %s4263_s28 = int_to_ptr.vmem [resolvable:$false] %s4262_s28 }
  0x44   : > { %s4264_s26 = scalar_lea.vmem %s4263_s28, 4096  ;;  %p4265_p13 = scmp.lt.s32.totalorder %s4556_s1, %s4263_s28 }
  0x45   : > { %p4260_p1 = pnand %p4259_p0, %p4515_p6  ;;  %p4266_p7 = scmp.lt.s32.totalorder %s4264_s26, %s4258_s12 }
  0x47   : > { %p4261_p2 = pneg %p4260_p1  ;;  %p4267_p4 = por %p4266_p7, %p4265_p13 }
  0x49   : > { %p4268_p5 = pnand %p4267_p4, %p4261_p2 }
  0x4b   : > { %4271 = shalt.err (!%p4268_p5)
}
  0x4c   : > { %s4357_s20 = smov 64   ;;  %s4358_s17 = smov 4  }
  0x4d   : > { %3875 = dma.hbm_to_vmem [thread:$0]  (%p4515_p6), %s4554_s22, 2048, %s4556_s1, %s4558_s14, %s4357_s20, %s4357_s20, %s4358_s17  }
  0x4e   : > { %624 = sbr.rel (!%p4534_p11) target bundleno = 96 (0x60), region = 60  ;;  %s626_s9 = sand.u32 (%p4534_p11), 1, %s4322_s25  }
  0x4f   : > { %s3630_s21 = sshll.u32 (%p4534_p11), %s4346_s30, 1  ;;  %s3629_s16 = sshll.u32 (%p4534_p11), %s626_s9, 7 }
  0x50   : > { %s3631_s12 = sshll.u32 (%p4534_p11), %s4350_s18, 6  ;;  %s5491_s10 = sld [smem:[#allocation36_spill]] (%p4534_p11) }
  0x51   : > { %s631_s13 = sadd.s32 (%p4534_p11), %s3631_s12, %s3630_s21  ;;  %s628_s14 = scalar_lea.vmem (%p4534_p11), [#allocation7], %s3629_s16 }
  0x52   : > { %s3632_s28 = sshll.u32 (%p4534_p11), %s631_s13, 2 }
  0x56   : > { %s4590_s7 = scalar_lea.vmem %s5491_s10, %s3632_s28 }
  0x57   : > { %v691_v0 = vld [vmem:[%s4590_s7] sm:$0xff]  ;;  %v693_v1 = vld [vmem:[%s4590_s7 + $0x10] sm:$0xff] }
  0x58   : > { %v695_v2 = vld [vmem:[%s4590_s7 + $0x20] sm:$0xff]  ;;  %692 = vst [vmem:[%s628_s14] sm:$0xff] %v691_v0  ;;  %694 = vst [vmem:[%s628_s14 + $0x8] sm:$0xff] %v693_v1  ;;  %v697_v3 = vld [vmem:[%s4590_s7 + $0x30] sm:$0xff] }
  0x59   : > { %696 = vst [vmem:[%s628_s14 + $0x10] sm:$0xff] %v695_v2  ;;  %v699_v4 = vld [vmem:[%s4590_s7 + $0x40] sm:$0xff]  ;;  %v701_v5 = vld [vmem:[%s4590_s7 + $0x50] sm:$0xff]  ;;  %698 = vst [vmem:[%s628_s14 + $0x18] sm:$0xff] %v697_v3 }
  0x5a   : > { %700 = vst [vmem:[%s628_s14 + $0x20] sm:$0xff] %v699_v4  ;;  %702 = vst [vmem:[%s628_s14 + $0x28] sm:$0xff] %v701_v5  ;;  %v703_v6 = vld [vmem:[%s4590_s7 + $0x60] sm:$0xff]  ;;  %v705_v7 = vld [vmem:[%s4590_s7 + $0x70] sm:$0xff] }
  0x5b   : > { %v707_v8 = vld [vmem:[%s4590_s7 + $0x80] sm:$0xff]  ;;  %704 = vst [vmem:[%s628_s14 + $0x30] sm:$0xff] %v703_v6  ;;  %706 = vst [vmem:[%s628_s14 + $0x38] sm:$0xff] %v705_v7  ;;  %v709_v9 = vld [vmem:[%s4590_s7 + $0x90] sm:$0xff] }
  0x5c   : > { %708 = vst [vmem:[%s628_s14 + $0x40] sm:$0xff] %v707_v8  ;;  %v711_v10 = vld [vmem:[%s4590_s7 + $0xa0] sm:$0xff]  ;;  %v713_v11 = vld [vmem:[%s4590_s7 + $0xb0] sm:$0xff]  ;;  %710 = vst [vmem:[%s628_s14 + $0x48] sm:$0xff] %v709_v9 }
  0x5d   : > { %712 = vst [vmem:[%s628_s14 + $0x50] sm:$0xff] %v711_v10  ;;  %714 = vst [vmem:[%s628_s14 + $0x58] sm:$0xff] %v713_v11  ;;  %v715_v12 = vld [vmem:[%s4590_s7 + $0xc0] sm:$0xff]  ;;  %v717_v13 = vld [vmem:[%s4590_s7 + $0xd0] sm:$0xff] }
  0x5e   : > { %v719_v14 = vld [vmem:[%s4590_s7 + $0xe0] sm:$0xff]  ;;  %716 = vst [vmem:[%s628_s14 + $0x60] sm:$0xff] %v715_v12  ;;  %718 = vst [vmem:[%s628_s14 + $0x68] sm:$0xff] %v717_v13  ;;  %v721_v15 = vld [vmem:[%s4590_s7 + $0xf0] sm:$0xff] }
  0x5f   : > { %720 = vst [vmem:[%s628_s14 + $0x70] sm:$0xff] %v719_v14  ;;  %722 = vst [vmem:[%s628_s14 + $0x78] sm:$0xff] %v721_v15 }
  0x60 PF: > { %p3633_p6 = scmp.ge.s32.totalorder %s4354_s19, 1  ;;  %p739_p7 = scmp.lt.s32.totalorder %s4354_s19, 5 }
  0x62   : > { %p740_p11 = pnand %p3633_p6, %p739_p7 }
  0x64   : > { %743 = sbr.rel (%p740_p11) target bundleno = 2296 (0x8f8), region = 102 }
  0x6b   : > { %s745_s8 = sand.u32 1, %s4330_s27   ;;  %p5493_p13 = scmp.ne.s32.totalorder %s5484_s11, 0 }
  0x6c   : > { %s3634_s15 = sshll.u32 %s745_s8, 7  ;;  %s746_s23 = scalar_lea.sflag [#allocation6], %s745_s8 }
  0x6d   : > { %s4611_s22 = scalar_lea.vmem [#allocation5], %s3634_s15 }
  0x6e   : > { %5492 = sst [smem:[#allocation22_spill]] %s4611_s22 }
  0x6f   : > { %4313 = dma.done.wait (%p5493_p13), %s746_s23, 2048  }
  0x70   : > { %4315 = vsyncadd (%p5493_p13), %s746_s23, 4294965248  ;;  %s755_s7 = sand.u32 1, %s4318_s24   ;;  %p885_p3 = scmp.lt.s32.totalorder %s4342_s0, 1 }
  0x71   : > { %s3635_s1 = sshll.u32 %s755_s7, 7  ;;  %s3636_s20 = sshll.u32 %s755_s7, 5 }
  0x72   : > { %s4620_s17 = scalar_select %p885_p3, %s4342_s0, 1 }
  0x73   : > { %s4623_s9 = sshll.u32 %s4338_s29, 1  ;;  %s5494_s13 = sld [smem:[#allocation26_spill]] }
  0x74   : > { %s3794_s11 = sshll.u32 %s4620_s17, 4  ;;  %s3795_s21 = sshll.u32 %s4620_s17, 6 }
  0x75   : > { %s5495_s14 = sld [smem:[#allocation27_spill]]  ;;  %s5497_s2 = sld [smem:[#allocation28_spill]] }
  0x76   : > { %s5498_s3 = sld [smem:[#allocation29_spill]]  ;;  %s5500_s4 = sld [smem:[#allocation30_spill]] }
  0x77   : > { %s5501_s5 = sld [smem:[#allocation31_spill]]  ;;  %s5502_s6 = sld [smem:[#allocation32_spill]] }
  0x78   : > { %s3651_s10 = sshll.u32 %s4620_s17, 2  ;;  %s5503_s25 = sld [smem:[#allocation33_spill]] }
  0x79   : > { %s4630_s24 = scalar_lea.vmem %s5494_s13, %s3794_s11  ;;  %s3799_s13 = sshll.u32 %s4620_s17, 7 }
  0x7a   : > { %p931_p8 = scmp.lt.s32.totalorder %s4623_s9, 3  ;;  %s5505_s26 = sld [smem:[#allocation39_spill]] }
  0x7b   : > { %s4635_s8 = scalar_lea.vmem %s5495_s14, %s3795_s21  ;;  %s4640_s7 = scalar_lea.vmem %s5497_s2, %s3794_s11 }
  0x7c   : > { %5496 = sst [smem:[#allocation23_spill]] %s4635_s8  ;;  %s4645_s30 = scalar_lea.vmem %s5498_s3, %s3794_s11 }
  0x7d   : > { %5499 = sst [smem:[#allocation24_spill]] %s4645_s30  ;;  %s4650_s12 = scalar_lea.vmem %s5500_s4, %s3794_s11 }
  0x7e   : > { %s4656_s21 = scalar_lea.vmem %s5501_s5, %s3799_s13  ;;  %s3800_s14 = sshll.u32 %s4620_s17, 9 }
  0x7f   : > { %s4662_s2 = scalar_lea.vmem %s5502_s6, %s3800_s14  ;;  %s4668_s19 = scalar_lea.vmem %s5503_s25, %s3651_s10 }
  0x80   : > { %s4678_s5 = scalar_lea.vmem %s5505_s26, %s3794_s11  ;;  %s5507_s14 = sld [smem:[#allocation40_spill]] }
  0x81   : > { %5506 = sst [smem:[#allocation25_spill]] %s4678_s5  ;;  %s5508_s3 = sld [smem:[#allocation41_spill]] }
  0x82   : > { %s932_s18 = scalar_select %p931_p8, %s4623_s9, 3 }
  0x83   : > { %s5509_s4 = sld [smem:[#allocation42_spill]]  ;;  %s5510_s13 = sld [smem:[#allocation43_spill]] }
  0x84   : > { %s4701_s5 = sadd.s32 %s3651_s10, %s932_s18  ;;  %s4707_s8 = scalar_lea.vmem [#allocation7], %s3635_s1 }
  0x85   : > { %p3664_p9 = scmp.ne.s32.totalorder %s4338_s29, 0 }
  0x86   : > { %s4683_s23 = scalar_lea.vmem %s5507_s14, %s3794_s11  ;;  %s5511_s14 = sld [smem:[#allocation37_spill]]  ;;  %v3966_v16 = vld [vmem:[%s4662_s2 + $0xc] ss:$16 sps:$4 sm:$0xff] (!%p3664_p9)   ;;  %v3968_v17 = vld [vmem:[%s4662_s2 + $0x8] ss:$16 sps:$4 sm:$0xff] (!%p3664_p9)   ;;  %v4359_v18 = vmov (!%p3664_p9), 0  }
  0x87   : > { %s4688_s25 = scalar_lea.vmem %s5508_s3, %s3794_s11  ;;  %s4709_s3 = scalar_lea.vmem [#allocation8], %s3636_s20  ;;  %3965 = vset.pattern.permute.xlu1 (!%p3664_p9), %v4359_v18  ;;  %3964 = vset.pattern.permute.xlu0 (!%p3664_p9), %v4359_v18  ;;  %v3969_v19 = vld [vmem:[%s4662_s2 + $0x2c] ss:$16 sps:$4 sm:$0xff] (!%p3664_p9)   ;;  %v3971_v20 = vld [vmem:[%s4662_s2 + $0x28] ss:$16 sps:$4 sm:$0xff] (!%p3664_p9)   ;;  %v970_v58 = vld [vmem:[%s4640_s7] sm:$0xff] (!%p3664_p9) }
  0x88   : > { %967 = sbr.rel (%p3664_p9) target bundleno = 1564 (0x61c), region = 114  ;;  %1454 = vmatprep.subr.bf16.mxu1 (!%p3664_p9), %v3966_v16  ;;  %v3972_v21 = vld [vmem:[%s4662_s2 + $0x4c] ss:$16 sps:$4 sm:$0xff] (!%p3664_p9)   ;;  %v3977_v22 = vld [vmem:[%s4662_s2 + $0x4] ss:$16 sps:$4 sm:$0xff] (!%p3664_p9)   ;;  %vm1577_vm0 = vcmask (!%p3664_p9), 523264  }
  0x89   : > { %s4694_s16 = scalar_lea.vmem %s5509_s4, %s3794_s11  ;;  %s4699_s26 = scalar_lea.vmem %s5510_s13, %s3794_s11  ;;  %1455 = vmatpush1.bf16.msra.mxu1 (!%p3664_p9), %v3968_v17  ;;  %v3980_v23 = vld [vmem:[%s4662_s2] ss:$16 sps:$4 sm:$0xff] (!%p3664_p9)   ;;  %v3974_v24 = vld [vmem:[%s4662_s2 + $0x48] ss:$16 sps:$4 sm:$0xff] (!%p3664_p9)   ;;  %1411 = vmatprep.subr.bf16.mxu0 (!%p3664_p9), %v3977_v22  ;;  %v3975_v25 = vld [vmem:[%s4662_s2 + $0x6c] ss:$16 sps:$4 sm:$0xff] (!%p3664_p9)  }
  0x8a   : > { %1456 = vmatprep.subr.bf16.mxu1 (!%p3664_p9), %v3969_v19  ;;  %1412 = vmatpush1.bf16.msra.mxu0 (!%p3664_p9), %v3980_v23  ;;  %v3983_v26 = vld [vmem:[%s4662_s2 + $0x24] ss:$16 sps:$4 sm:$0xff] (!%p3664_p9)   ;;  %v3986_v27 = vld [vmem:[%s4662_s2 + $0x20] ss:$16 sps:$4 sm:$0xff] (!%p3664_p9)   ;;  %v3979_v28 = vld [vmem:[%s4662_s2 + $0x68] ss:$16 sps:$4 sm:$0xff] (!%p3664_p9)  }
  0x8b   : > { %1413 = vmatprep.subr.bf16.mxu0 (!%p3664_p9), %v3983_v26  ;;  %v3981_v29 = vld [vmem:[%s4662_s2 + $0x8c] ss:$16 sps:$4 sm:$0xff] (!%p3664_p9)   ;;  %v3989_v30 = vld [vmem:[%s4662_s2 + $0x44] ss:$16 sps:$4 sm:$0xff] (!%p3664_p9)   ;;  %v3992_v31 = vld [vmem:[%s4662_s2 + $0x40] ss:$16 sps:$4 sm:$0xff] (!%p3664_p9)  }
  0x8c   : > { %s935_s6 = scalar_lea.vmem %s5511_s14, %s4701_s5  ;;  %v3995_v32 = vld [vmem:[%s4662_s2 + $0x64] ss:$16 sps:$4 sm:$0xff] (!%p3664_p9)   ;;  %v3985_v33 = vld [vmem:[%s4662_s2 + $0x88] ss:$16 sps:$4 sm:$0xff] (!%p3664_p9)   ;;  %v3987_v34 = vld [vmem:[%s4662_s2 + $0xac] ss:$16 sps:$4 sm:$0xff] (!%p3664_p9)  }
  0x8d   : > { %1457 = vmatpush1.bf16.msra.mxu1 (!%p3664_p9), %v3971_v20  ;;  %v3998_v35 = vld [vmem:[%s4662_s2 + $0x60] ss:$16 sps:$4 sm:$0xff] (!%p3664_p9)   ;;  %v4001_v36 = vld [vmem:[%s4662_s2 + $0x84] ss:$16 sps:$4 sm:$0xff] (!%p3664_p9)   ;;  %v3991_v37 = vld [vmem:[%s4662_s2 + $0xa8] ss:$16 sps:$4 sm:$0xff] (!%p3664_p9)  }
  0x8e   : > { %1458 = vmatprep.subr.bf16.mxu1 (!%p3664_p9), %v3972_v21  ;;  %1414 = vmatpush1.bf16.msra.mxu0 (!%p3664_p9), %v3986_v27  ;;  %v3993_v38 = vld [vmem:[%s4662_s2 + $0xcc] ss:$16 sps:$4 sm:$0xff] (!%p3664_p9)   ;;  %v4004_v39 = vld [vmem:[%s4662_s2 + $0x80] ss:$16 sps:$4 sm:$0xff] (!%p3664_p9)   ;;  %v4007_v40 = vld [vmem:[%s4662_s2 + $0xa4] ss:$16 sps:$4 sm:$0xff] (!%p3664_p9)  }
  0x8f   : > { %1415 = vmatprep.subr.bf16.mxu0 %v3989_v30  ;;  %v3997_v41 = vld [vmem:[%s4662_s2 + $0xc8] ss:$16 sps:$4 sm:$0xff]   ;;  %v3999_v42 = vld [vmem:[%s4662_s2 + $0xec] ss:$16 sps:$4 sm:$0xff]   ;;  %v4010_v43 = vld [vmem:[%s4662_s2 + $0xa0] ss:$16 sps:$4 sm:$0xff]  }
  0x90   : > { %v4013_v44 = vld [vmem:[%s4662_s2 + $0xc4] ss:$16 sps:$4 sm:$0xff]   ;;  %v4003_v45 = vld [vmem:[%s4662_s2 + $0xe8] ss:$16 sps:$4 sm:$0xff]   ;;  %v4005_v46 = vld [vmem:[%s4662_s2 + $0x10c] ss:$16 sps:$4 sm:$0xff]  }
  0x91   : > { %1459 = vmatpush1.bf16.msra.mxu1 %v3974_v24  ;;  %v4016_v47 = vld [vmem:[%s4662_s2 + $0xc0] ss:$16 sps:$4 sm:$0xff]   ;;  %v4019_v48 = vld [vmem:[%s4662_s2 + $0xe4] ss:$16 sps:$4 sm:$0xff]   ;;  %v4009_v49 = vld [vmem:[%s4662_s2 + $0x108] ss:$16 sps:$4 sm:$0xff]  }
  0x92   : > { %1460 = vmatprep.subr.bf16.mxu1 %v3975_v25  ;;  %1416 = vmatpush1.bf16.msra.mxu0 %v3992_v31  ;;  %v4011_v50 = vld [vmem:[%s4662_s2 + $0x12c] ss:$16 sps:$4 sm:$0xff]   ;;  %v4022_v51 = vld [vmem:[%s4662_s2 + $0xe0] ss:$16 sps:$4 sm:$0xff]   ;;  %v4025_v52 = vld [vmem:[%s4662_s2 + $0x104] ss:$16 sps:$4 sm:$0xff]  }
  0x93   : > { %1417 = vmatprep.subr.bf16.mxu0 %v3995_v32  ;;  %v4015_v53 = vld [vmem:[%s4662_s2 + $0x128] ss:$16 sps:$4 sm:$0xff]   ;;  %v4017_v54 = vld [vmem:[%s4662_s2 + $0x14c] ss:$16 sps:$4 sm:$0xff]   ;;  %v4028_v55 = vld [vmem:[%s4662_s2 + $0x100] ss:$16 sps:$4 sm:$0xff]  }
  0x94   : > { %v4031_v56 = vld [vmem:[%s4662_s2 + $0x124] ss:$16 sps:$4 sm:$0xff]   ;;  %v4021_v57 = vld [vmem:[%s4662_s2 + $0x148] ss:$16 sps:$4 sm:$0xff]   ;;  %v4023_v60 = vld [vmem:[%s4662_s2 + $0x16c] ss:$16 sps:$4 sm:$0xff]  }
  0x95   : > { %1461 = vmatpush1.bf16.msra.mxu1 %v3979_v28  ;;  %v971_v59 = vld [vmem:[%s4640_s7 + $0x8] sm:$0xff]  ;;  %v4034_v61 = vld [vmem:[%s4662_s2 + $0x120] ss:$16 sps:$4 sm:$0xff]   ;;  %v4037_v63 = vld [vmem:[%s4662_s2 + $0x144] ss:$16 sps:$4 sm:$0xff]   ;;  %s5513_s0 = sld [smem:[#allocation23_spill]] }
  0x96   : > { %1462 = vmatprep.subr.bf16.mxu1 %v3981_v29  ;;  %1418 = vmatpush1.bf16.msra.mxu0 %v3998_v35  ;;  %v1009_v62 = vpack.c.bf16 %v971_v59, %v970_v58  ;;  %v4027_v0 = vld [vmem:[%s4662_s2 + $0x168] ss:$16 sps:$4 sm:$0xff]   ;;  %v4029_v1 = vld [vmem:[%s4662_s2 + $0x18c] ss:$16 sps:$4 sm:$0xff]   ;;  %v4040_v2 = vld [vmem:[%s4662_s2 + $0x140] ss:$16 sps:$4 sm:$0xff]  }
  0x97   : > { %1419 = vmatprep.subr.bf16.mxu0 %v4001_v36  ;;  %v4043_v3 = vld [vmem:[%s4662_s2 + $0x164] ss:$16 sps:$4 sm:$0xff]   ;;  %v4033_v4 = vld [vmem:[%s4662_s2 + $0x188] ss:$16 sps:$4 sm:$0xff]   ;;  %v4035_v5 = vld [vmem:[%s4662_s2 + $0x1ac] ss:$16 sps:$4 sm:$0xff]  }
  0x98   : > { %1486 = vmatprep.mubr.bf16.mxu1 %v1009_v62  ;;  %1443 = vmatprep.mubr.bf16.mxu0 %v1009_v62  ;;  %v4046_v6 = vld [vmem:[%s4662_s2 + $0x160] ss:$16 sps:$4 sm:$0xff]   ;;  %v4049_v7 = vld [vmem:[%s4662_s2 + $0x184] ss:$16 sps:$4 sm:$0xff]   ;;  %v4039_v8 = vld [vmem:[%s4662_s2 + $0x1a8] ss:$16 sps:$4 sm:$0xff]  }
  0x99   : > { %1463 = vmatpush1.bf16.msra.mxu1 %v3985_v33  ;;  %v4041_v9 = vld [vmem:[%s4662_s2 + $0x1cc] ss:$16 sps:$4 sm:$0xff]   ;;  %v4052_v10 = vld [vmem:[%s4662_s2 + $0x180] ss:$16 sps:$4 sm:$0xff]   ;;  %v4045_v11 = vld [vmem:[%s4662_s2 + $0x1c8] ss:$16 sps:$4 sm:$0xff]  }
  0x9a   : > { %1464 = vmatprep.subr.bf16.mxu1 %v3987_v34  ;;  %1420 = vmatpush1.bf16.msra.mxu0 %v4004_v39  ;;  %v4056_v12 = vld [vmem:[%s4662_s2 + $0x1a4] ss:$16 sps:$4 sm:$0xff]   ;;  %v4047_v13 = vld [vmem:[%s4662_s2 + $0x1ec] ss:$16 sps:$4 sm:$0xff]   ;;  %v4058_v14 = vld [vmem:[%s4662_s2 + $0x1a0] ss:$16 sps:$4 sm:$0xff]  }
  0x9b   : > { %1421 = vmatprep.subr.bf16.mxu0 %v4007_v40  ;;  %v4062_v15 = vld [vmem:[%s4662_s2 + $0x1c4] ss:$16 sps:$4 sm:$0xff]   ;;  %v4051_v16 = vld [vmem:[%s4662_s2 + $0x1e8] ss:$16 sps:$4 sm:$0xff]   ;;  %v4064_v21 = vld [vmem:[%s4662_s2 + $0x1c0] ss:$16 sps:$4 sm:$0xff]  }
  0x9c   : > { %v974_v17 = vld [vmem:[%s4650_s12] sm:$0xff]  ;;  %v975_v19 = vld [vmem:[%s4650_s12 + $0x8] sm:$0xff]  ;;  %vm2055_vm1 = vcmask 1041409   ;;  %vm2057_vm2 = vcmask 1042434   ;;  %vm2059_vm3 = vcmask 1043459   ;;  %vm2061_vm4 = vcmask 1044484  }
  0x9d   : > { %1465 = vmatpush1.bf16.msra.mxu1 %v3991_v37  ;;  %v4055_v20 = vld [vmem:[%s4656_s21 + $0x4] ss:$16 sps:$4 sm:$0xff]   ;;  %v4053_v23 = vld [vmem:[%s4656_s21] ss:$16 sps:$4 sm:$0xff]   ;;  %v1008_v24 = vpack.c.bf16 %v975_v19, %v974_v17  ;;  %v969_v33 = vld [vmem:[%s4630_s24 + $0x8] sm:$0xff]  ;;  %vm2063_vm5 = vcmask 1045509  }
  0x9e   : > { %1466 = vmatprep.subr.bf16.mxu1 %v3993_v38  ;;  %1422 = vmatpush1.bf16.msra.mxu0 %v4010_v43  ;;  %v4068_v22 = vld [vmem:[%s4662_s2 + $0x1e4] ss:$16 sps:$4 sm:$0xff]   ;;  %v4070_v26 = vld [vmem:[%s4662_s2 + $0x1e0] ss:$16 sps:$4 sm:$0xff]   ;;  %v4076_v34 = vld [vmem:[%s4656_s21 + $0xc] ss:$16 sps:$4 sm:$0xff]   ;;  %v1669_v43 = vlaneseq }
  0x9f   : > { %1423 = vmatprep.subr.bf16.mxu0 %v4013_v44  ;;  %v4061_v25 = vld [vmem:[%s4656_s21 + $0x24] ss:$16 sps:$4 sm:$0xff]   ;;  %v4059_v27 = vld [vmem:[%s4656_s21 + $0x20] ss:$16 sps:$4 sm:$0xff]   ;;  %v4074_v36 = vld [vmem:[%s4656_s21 + $0x8] ss:$16 sps:$4 sm:$0xff]  }
  0xa0   : > { %v4067_v28 = vld [vmem:[%s4656_s21 + $0x44] ss:$16 sps:$4 sm:$0xff]   ;;  %v4065_v29 = vld [vmem:[%s4656_s21 + $0x40] ss:$16 sps:$4 sm:$0xff]   ;;  %v4079_v37 = vld [vmem:[%s4656_s21 + $0x2c] ss:$16 sps:$4 sm:$0xff]  }
  0xa1   : > { %1467 = vmatpush1.bf16.msra.mxu1 %v3997_v41  ;;  %v4073_v30 = vld [vmem:[%s4656_s21 + $0x64] ss:$16 sps:$4 sm:$0xff]   ;;  %v4071_v31 = vld [vmem:[%s4656_s21 + $0x60] ss:$16 sps:$4 sm:$0xff]   ;;  %v4077_v38 = vld [vmem:[%s4656_s21 + $0x28] ss:$16 sps:$4 sm:$0xff]  }
  0xa2   : > { %1468 = vmatprep.subr.bf16.mxu1 %v3999_v42  ;;  %1424 = vmatpush1.bf16.msra.mxu0 %v4016_v47  ;;  %v968_v32 = vld [vmem:[%s4630_s24] sm:$0xff]  ;;  %v4082_v39 = vld [vmem:[%s4656_s21 + $0x4c] ss:$16 sps:$4 sm:$0xff]   ;;  %v4080_v40 = vld [vmem:[%s4656_s21 + $0x48] ss:$16 sps:$4 sm:$0xff]   ;;  %v4805_v47 = vshrl.u32 %v1669_v43, 7 }
  0xa3   : > { %1425 = vmatprep.subr.bf16.mxu0 %v4019_v48  ;;  %v1010_v35 = vpack.c.bf16 %v969_v33, %v968_v32  ;;  %v4085_v41 = vld [vmem:[%s4656_s21 + $0x6c] ss:$16 sps:$4 sm:$0xff]   ;;  %v4083_v42 = vld [vmem:[%s4656_s21 + $0x68] ss:$16 sps:$4 sm:$0xff]   ;;  %s5512_s2 = sld [smem:[#allocation24_spill]]  ;;  %vm2065_vm6 = vcmask 1046534  }
  0xa4   : > { %v4808_v48 = vsub.s32 0, %v4805_v47  ;;  %vm2067_vm7 = vcmask 1047559   ;;  %vm2078_vm8 = vcmask 64512   ;;  %s5514_s30 = sld [smem:[#allocation22_spill]]  ;;  %vm2973_vm9 = vcmask 7168   ;;  %s5528_s20 = sld [smem:[#allocation35_spill]] }
  0xa5   : > { %1469 = vmatpush1.bf16.msra.mxu1 %v4003_v45 }
  0xa6   : > { %1470 = vmatprep.subr.bf16.mxu1 %v4005_v46  ;;  %1426 = vmatpush1.bf16.msra.mxu0 %v4022_v51 }
  0xa7   : > { %1427 = vmatprep.subr.bf16.mxu0 %v4025_v52 }
  0xa9   : > { %1471 = vmatpush1.bf16.msra.mxu1 %v4009_v49  ;;  %v1667_v49 = vld [vmem:[%s4668_s19] sm:$0xf]  ;;  %v973_v33 = vld [vmem:[%s5512_s2 + $0x8] sm:$0xff] }
  0xaa   : > { %1472 = vmatprep.subr.bf16.mxu1 %v4011_v50  ;;  %1428 = vmatpush1.bf16.msra.mxu0 %v4028_v55  ;;  %v4812_v50 = vsub.s32 1, %v4805_v47  ;;  %v1672_v51 = vrot.slane %v1667_v49, %v4808_v48  ;;  %s5529_s11 = scalar_lea.vmem %s5528_s20, %s4620_s17 }
  0xab   : > { %1429 = vmatprep.subr.bf16.mxu0 %v4031_v56 }
  0xad   : > { %1473 = vmatpush1.bf16.msra.mxu1 %v4015_v53  ;;  %v1676_v53 = vrot.slane %v1667_v49, %v4812_v50 }
  0xae   : > { %1474 = vmatprep.subr.bf16.mxu1 %v4017_v54  ;;  %1430 = vmatpush1.bf16.msra.mxu0 %v4034_v61 }
  0xaf   : > { %1431 = vmatprep.subr.bf16.mxu0 %v4037_v63 }
  0xb1   : > { %1475 = vmatpush1.bf16.msra.mxu1 %v4021_v57 }
  0xb2   : > { %1476 = vmatprep.subr.bf16.mxu1 %v4023_v60  ;;  %1432 = vmatpush1.bf16.msra.mxu0 %v4040_v2 }
  0xb3   : > { %1433 = vmatprep.subr.bf16.mxu0 %v4043_v3 }
  0xb5   : > { %1477 = vmatpush1.bf16.msra.mxu1 %v4027_v0 }
  0xb6   : > { %1478 = vmatprep.subr.bf16.mxu1 %v4029_v1  ;;  %1434 = vmatpush1.bf16.msra.mxu0 %v4046_v6 }
  0xb7   : > { %1435 = vmatprep.subr.bf16.mxu0 %v4049_v7  ;;  %v4821_v7 = vsub.s32 3, %v4805_v47 }
  0xb9   : > { %1479 = vmatpush1.bf16.msra.mxu1 %v4033_v4 }
  0xba   : > { %1480 = vmatprep.subr.bf16.mxu1 %v4035_v5  ;;  %1436 = vmatpush1.bf16.msra.mxu0 %v4052_v10  ;;  %v4817_v5 = vsub.s32 2, %v4805_v47 }
  0xbb   : > { %1437 = vmatprep.subr.bf16.mxu0 %v4056_v12  ;;  %v1684_v12 = vrot.slane %v1667_v49, %v4821_v7 }
  0xbc   : > { %v1680_v6 = vrot.slane %v1667_v49, %v4817_v5 }
  0xbd   : > { %1481 = vmatpush1.bf16.msra.mxu1 %v4039_v8 }
  0xbe   : > { %1482 = vmatprep.subr.bf16.mxu1 %v4041_v9  ;;  %1438 = vmatpush1.bf16.msra.mxu0 %v4058_v14 }
  0xbf   : > { %1439 = vmatprep.subr.bf16.mxu0 %v4062_v15 }
  0xc1   : > { %1483 = vmatpush1.bf16.msra.mxu1 %v4045_v11 }
  0xc2   : > { %1484 = vmatprep.subr.bf16.mxu1 %v4047_v13  ;;  %1440 = vmatpush1.bf16.msra.mxu0 %v4064_v21 }
  0xc3   : > { %1441 = vmatprep.subr.bf16.mxu0 %v4068_v22 }
  0xc5   : > { %1485 = vmatpush1.bf16.msra.mxu1 %v4051_v16 }
  0xc6   : > { %1581 = vmatprep.subr.bf16.mxu1 %v4055_v20  ;;  %1442 = vmatpush1.bf16.msra.mxu0 %v4070_v26 }
  0xc8   : > { %1487 = vmatmul.mubr.bf16.vlgmr.msra.gmra.mrb[0].mxu1 %v1008_v24 }
  0xc9   : > { %1582 = vmatpush1.bf16.msra.mxu1 %v4053_v23  ;;  %1613 = vmatprep.mubr.bf16.mxu1 %v4359_v18 }
  0xca   : > { %1583 = vmatprep.subr.bf16.mxu1 %v4061_v25  ;;  %1444 = vmatmul.mubr.bf16.vlgmr.msra.gmra.mrb[0].mxu0 %v1008_v24 }
  0xcd   : > { %1584 = vmatpush1.bf16.msra.mxu1 %v4059_v27 }
  0xce   : > { %1585 = vmatprep.subr.bf16.mxu1 %v4067_v28 }
  0xd1   : > { %1586 = vmatpush1.bf16.msra.mxu1 %v4065_v29 }
  0xd2   : > { %1587 = vmatprep.subr.bf16.mxu1 %v4073_v30  ;;  %v972_v30 = vld [vmem:[%s5512_s2] sm:$0xff] }
  0xd5   : > { %1588 = vmatpush1.bf16.msra.mxu1 %v4071_v31 }
  0xd6   : > { %1624 = vmatprep.subr.bf16.mxu1 %v4076_v34 }
  0xd8   : > { %3745 = vmatmul.mubr.msk.bf16.vlgmr.msra.gmra.mrb[4].mxu1 %vm1577_vm0, %v1010_v35 }
  0xd9   : > { %1625 = vmatpush1.bf16.msra.mxu1 %v4074_v36  ;;  %1656 = vmatprep.mubr.bf16.mxu1 %v4359_v18 }
  0xda   : > { %1626 = vmatprep.subr.bf16.mxu1 %v4079_v37 }
  0xdd   : > { %1627 = vmatpush1.bf16.msra.mxu1 %v4077_v38 }
  0xde   : > { %1628 = vmatprep.subr.bf16.mxu1 %v4082_v39 }
  0xe1   : > { %1629 = vmatpush1.bf16.msra.mxu1 %v4080_v40 }
  0xe2   : > { %1630 = vmatprep.subr.bf16.mxu1 %v4085_v41 }
  0xe5   : > { %1631 = vmatpush1.bf16.msra.mxu1 %v4083_v42 }
  0xe8   : > { %3746 = vmatmul.mubr.msk.bf16.vlgmr.msra.gmra.mrb[0].mxu1 %vm1577_vm0, %v1010_v35 }
 0x19d   : > { %v1445_v44 = vpop.f32.mrb[0].mxu0 }
 0x19e   : > { %v1447_v45 = vpop.f32.mrb[1].mxu0 }
 0x19f   : > { %v1449_v46 = vpop.f32.mrb[2].mxu0 }
 0x1a0   : > { %v1451_v18 = vpop.f32.mrb[3].mxu0 }
 0x1ab   : > { %v1615_v52 = vpop.f32.mrb[4].mxu1 }
 0x1ac   : > { %v1616_v54 = vadd.f32 %v1615_v52, %v1445_v44  ;;  %v1617_v55 = vpop.f32.mrb[5].mxu1 }
 0x1ad   : > { %v1618_v56 = vadd.f32 %v1617_v55, %v1447_v45  ;;  %v1619_v57 = vpop.f32.mrb[6].mxu1 }
 0x1ae   : > { %v1689_v58 = vadd.f32 %v1672_v51, %v1616_v54  ;;  %v1620_v59 = vadd.f32 %v1619_v57, %v1449_v46  ;;  %v1621_v60 = vpop.f32.mrb[7].mxu1 }
 0x1af   : > { %v1690_v61 = vadd.f32 %v1676_v53, %v1618_v56  ;;  %v1622_v62 = vadd.f32 %v1621_v60, %v1451_v18  ;;  %v4360_v18 = vmov 1966171168   ;;  %v4841_v60 = vld [vmem:[%s5513_s0 + $0x20] sm:$0xff]  }
 0x1b0   : > { %v3747_v63 = vmul.f32 -1.442695, %v1689_v58  ;;  %v1693_v0 = vadd.f32 %v1672_v51, %v1620_v59  ;;  %v1749_v49 = vunpack.c.l.s4 %v4360_v18  ;;  %v4834_v58 = vld [vmem:[%s5513_s0] sm:$0xff]  }
 0x1b1   : > { %v3748_v1 = vmul.f32 -1.442695, %v1690_v61  ;;  %v1694_v2 = vadd.f32 %v1676_v53, %v1622_v62 }
 0x1b2   : > { %4102 = vpow2.f32 %v3747_v63  ;;  %v3750_v3 = vmul.f32 -1.442695, %v1693_v0  ;;  %v1750_v51 = vunpack.c.0.s8 %v1749_v49  ;;  %v3808_v63 = vunpack.c.l.bf16 %v4834_v58 }
 0x1b3   : > { %4104 = vpow2.f32 %v3748_v1  ;;  %v3751_v4 = vmul.f32 -1.442695, %v1694_v2 }
 0x1b4   : > { %4106 = vpow2.f32 %v3750_v3  ;;  %v4829_v53 = vsub.s32 %v1750_v51, %v4805_v47  ;;  %v5449_v3 = vunpack.c.l.bf16 %v4841_v60 }
 0x1b5   : > { %4108 = vpow2.f32 %v3751_v4 }
 0x1bb   : > { %v1658_v8 = vpop.f32.mrb[0].mxu1 }
 0x1bc   : > { %v4103_v9 = vpop.eup %4102  ;;  %v1691_v10 = vadd.f32 %v1680_v6, %v1658_v8  ;;  %v1660_v11 = vpop.f32.mrb[1].mxu1 }
 0x1bd   : > { %v4105_v13 = vpop.eup %4104  ;;  %v1715_v14 = vadd.f32 1.0, %v4103_v9  ;;  %v1662_v15 = vpop.f32.mrb[2].mxu1  ;;  %v1692_v25 = vadd.f32 %v1684_v12, %v1660_v11 }
 0x1be   : > { %v4107_v16 = vpop.eup %4106  ;;  %v1716_v17 = vadd.f32 1.0, %v4105_v13  ;;  %v1695_v19 = vadd.f32 %v1680_v6, %v1662_v15  ;;  %v1664_v20 = vpop.f32.mrb[3].mxu1  ;;  %v3749_v23 = vmul.f32 -1.442695, %v1691_v10 }
 0x1bf   : > { %v4109_v21 = vpop.eup %4108  ;;  %4110 = vrcp.f32 %v1715_v14  ;;  %v1718_v22 = vadd.f32 1.0, %v4107_v16  ;;  %v1696_v27 = vadd.f32 %v1684_v12, %v1664_v20  ;;  %v3809_v12 = vunpack.c.h.bf16 %v4834_v58 }
 0x1c0   : > { %4112 = vrcp.f32 %v1716_v17  ;;  %v1719_v24 = vadd.f32 1.0, %v4109_v21  ;;  %v3752_v26 = vmul.f32 -1.442695, %v1695_v19  ;;  %v3825_v20 = vunpack.c.h.bf16 %v4841_v60  ;;  %v4870_v21 = vld [vmem:[%s5513_s0 + $0x8] sm:$0xff]  }
 0x1c1   : > { %4114 = vrcp.f32 %v1718_v22  ;;  %v5455_v51 = vunpack.c.h.bf16 %v4870_v21 }
 0x1c2   : > { %4116 = vrcp.f32 %v1719_v24 }
 0x1c3   : > { %4118 = vpow2.f32 %v3749_v23 }
 0x1c4   : > { %4120 = vtanh.f32 %v1692_v25 }
 0x1c5   : > { %4122 = vpow2.f32 %v3752_v26  ;;  %v4877_v26 = vld [vmem:[%s5513_s0 + $0x28] sm:$0xff]  }
 0x1c6   : > { %4124 = vtanh.f32 %v1696_v27 }
 0x1c9   : > { %v4111_v28 = vpop.eup %4110 }
 0x1ca   : > { %v4113_v29 = vpop.eup %4112 }
 0x1cb   : > { %v4115_v31 = vpop.eup %4114  ;;  %v1735_v35 = vmul.f32 %v4113_v29, %v972_v30  ;;  %v4884_v30 = vld [vmem:[%s5513_s0 + $0x10] sm:$0xff]  }
 0x1cc   : > { %v4117_v32 = vpop.eup %4116 }
 0x1cd   : > { %v4119_v34 = vpop.eup %4118  ;;  %v1736_v40 = vmul.f32 %v4117_v32, %v973_v33  ;;  %v5454_v33 = vunpack.c.l.bf16 %v4877_v26 }
 0x1ce   : > { %v4121_v36 = vpop.eup %4120  ;;  %v1717_v37 = vadd.f32 1.0, %v4119_v34 }
 0x1cf   : > { %v4123_v38 = vpop.eup %4122  ;;  %v1737_v39 = vmul.f32 %v4121_v36, %v4111_v28  ;;  %v3812_v28 = vunpack.c.l.bf16 %v4870_v21 }
 0x1d0   : > { %v4125_v41 = vpop.eup %4124  ;;  %v1720_v42 = vadd.f32 1.0, %v4123_v38  ;;  %4126 = vrcp.f32 %v1717_v37  ;;  %v5453_v37 = vunpack.c.l.bf16 %v4884_v30 }
 0x1d1   : > { %v1739_v44 = vadd.f32 %v1737_v39, %v1735_v35  ;;  %v1738_v45 = vmul.f32 %v4125_v41, %v4115_v31  ;;  %v4892_v35 = vld [vmem:[%s5513_s0 + $0x30] sm:$0xff]  }
 0x1d3   : > { %4128 = vtanh.f32 %v1739_v44  ;;  %2967 = vst [vmem:[%s4694_s16] sm:$0xff] %v1739_v44  ;;  %v1740_v46 = vadd.f32 %v1738_v45, %v1736_v40 }
 0x1d4   : > { %4130 = vrcp.f32 %v1720_v42  ;;  %v5450_v42 = vunpack.c.l.bf16 %v4892_v35 }
 0x1d5   : > { %4132 = vtanh.f32 %v1740_v46  ;;  %2968 = vst [vmem:[%s4694_s16 + $0x8] sm:$0xff] %v1740_v46 }
 0x1da   : > { %v4127_v52 = vpop.eup %4126 }
 0x1dd   : > { %v4129_v54 = vpop.eup %4128 }
 0x1de   : > { %v4131_v55 = vpop.eup %4130  ;;  %v4831_v56 = vmul.f32 %v4129_v54, %v4127_v52 }
 0x1df   : > { %v4133_v57 = vpop.eup %4132 }
 0x1e0   : > { %v1754_v59 = vrot.slane %v4831_v56, %v4829_v53  ;;  %2965 = vst [vmem:[%s4688_s25] sm:$0xff] %v4831_v56  ;;  %v4843_v61 = vmul.f32 %v4133_v57, %v4131_v55  ;;  %v1747_v62 = vcombine.high %v4831_v56, %v4831_v56  ;;  %v5452_v57 = vunpack.c.h.bf16 %v4877_v26 }
 0x1e2   : > { %v1770_v0 = vrot.slane %v1754_v59, %v4829_v53  ;;  %v1803_v1 = vrot.slane %v4843_v61, %v4829_v53  ;;  %2966 = vst [vmem:[%s4688_s25 + $0x8] sm:$0xff] %v4843_v61  ;;  %v1762_v2 = vcombine.high %v1754_v59, %v1754_v59  ;;  %v1796_v4 = vcombine.high %v4843_v61, %v4843_v61 }
 0x1e3   : > { %v1761_v14 = vrot.slane %v1747_v62, %v4829_v53 }
 0x1e4   : > { %v1848_v8 = vrot.slane %v1770_v0, %v4808_v48  ;;  %v1819_v9 = vrot.slane %v1803_v1, %v4829_v53  ;;  %v1784_v10 = vrot.slane %v1762_v2, %v4829_v53  ;;  %v1811_v11 = vcombine.high %v1803_v1, %v1803_v1 }
 0x1e5   : > { %v1792_v13 = vcombine.high %v1770_v0, %v1770_v0  ;;  %v1810_v25 = vrot.slane %v1796_v4, %v4829_v53  ;;  %v1777_v31 = vrot.slane %v1761_v14, %v4829_v53  ;;  %v1763_v41 = vcombine.high %v1761_v14, %v1761_v14 }
 0x1e6   : > { %v1925_v15 = vmul.f32 %v3808_v63, %v1848_v8  ;;  %v1880_v16 = vrot.slane %v1819_v9, %v4808_v48  ;;  %v1852_v17 = vrot.slane %v1784_v10, %v4808_v48  ;;  %v1833_v19 = vrot.slane %v1811_v11, %v4829_v53  ;;  %v4918_v8 = vld [vmem:[%s5513_s0 + $0x18] sm:$0xff]  }
 0x1e7   : > { %v1841_v24 = vcombine.high %v1819_v9, %v1819_v9  ;;  %v1856_v29 = vrot.slane %v1792_v13, %v4808_v48  ;;  %v1826_v36 = vrot.slane %v1810_v25, %v4829_v53  ;;  %v1864_v39 = vrot.slane %v1777_v31, %v4808_v48  ;;  %v4925_v13 = vld [vmem:[%s5513_s0 + $0x38] sm:$0xff]  }
 0x1e8   : > { %1941 = vadd.xlane.f32.xlu0 %v1925_v15  ;;  %v1933_v22 = vmul.f32 %v5449_v3, %v1880_v16  ;;  %v1884_v23 = vrot.slane %v1833_v19, %v4808_v48  ;;  %v1926_v27 = vmul.f32 %v3809_v12, %v1852_v17  ;;  %v1794_v40 = vcombine.high %v1784_v10, %v1784_v10 }
 0x1e9   : > { %v1888_v34 = vrot.slane %v1841_v24, %v4808_v48  ;;  %v1927_v38 = vmul.f32 %v3812_v28, %v1856_v29  ;;  %v1896_v45 = vrot.slane %v1826_v36, %v4808_v48  ;;  %v1843_v46 = vcombine.high %v1833_v19, %v1833_v19 }
 0x1ea   : > { %1957 = vadd.xlane.f32.xlu1 %v1933_v22  ;;  %v1934_v32 = vmul.f32 %v3825_v20, %v1884_v23  ;;  %v1812_v18 = vcombine.high %v1810_v25, %v1810_v25  ;;  %v1929_v49 = vmul.f32 %v5453_v37, %v1864_v39  ;;  %v1860_v52 = vrot.slane %v1794_v40, %v4808_v48 }
 0x1eb   : > { %v1935_v44 = vmul.f32 %v5454_v33, %v1888_v34  ;;  %v1791_v54 = vrot.slane %v1763_v41, %v4829_v53  ;;  %v1937_v55 = vmul.f32 %v5450_v42, %v1896_v45  ;;  %v1892_v59 = vrot.slane %v1843_v46, %v4808_v48 }
 0x1ec   : > { %1943 = vadd.xlane.f32.xlu0 %v1926_v27  ;;  %v1840_v62 = vrot.slane %v1812_v18, %v4829_v53  ;;  %v1928_v0 = vmul.f32 %v5455_v51, %v1860_v52  ;;  %v5451_v1 = vunpack.c.h.bf16 %v4884_v30  ;;  %v1793_v4 = vcombine.high %v1777_v31, %v1777_v31 }
 0x1ed   : > { %v1868_v2 = vrot.slane %v1791_v54, %v4808_v48  ;;  %v1936_v9 = vmul.f32 %v5452_v57, %v1892_v59  ;;  %v5448_v10 = vunpack.c.h.bf16 %v4892_v35  ;;  %v1842_v53 = vcombine.high %v1826_v36, %v1826_v36 }
 0x1ee   : > { %1959 = vadd.xlane.f32.xlu1 %v1934_v32  ;;  %v1900_v11 = vrot.slane %v1840_v62, %v4808_v48  ;;  %v5447_v15 = vunpack.c.l.bf16 %v4918_v8  ;;  %v1872_v16 = vrot.slane %v1793_v4, %v4808_v48  ;;  %v1795_v17 = vcombine.high %v1791_v54, %v1791_v54 }
 0x1ef   : > { %v1930_v14 = vmul.f32 %v5451_v1, %v1868_v2  ;;  %v5446_v22 = vunpack.c.l.bf16 %v4925_v13  ;;  %v1904_v23 = vrot.slane %v1842_v53, %v4808_v48  ;;  %v1844_v24 = vcombine.high %v1840_v62, %v1840_v62 }
 0x1f0   : > { %1945 = vadd.xlane.f32.xlu0 %v1927_v38  ;;  %v1938_v19 = vmul.f32 %v5448_v10, %v1900_v11  ;;  %v1931_v25 = vmul.f32 %v5447_v15, %v1872_v16  ;;  %v5445_v27 = vunpack.c.h.bf16 %v4918_v8  ;;  %v1876_v29 = vrot.slane %v1795_v17, %v4808_v48 }
 0x1f1   : > { %v1939_v31 = vmul.f32 %v5446_v22, %v1904_v23  ;;  %v5444_v32 = vunpack.c.h.bf16 %v4925_v13  ;;  %v1908_v34 = vrot.slane %v1844_v24, %v4808_v48 }
 0x1f2   : > { %1961 = vadd.xlane.f32.xlu1 %v1935_v44  ;;  %v1932_v36 = vmul.f32 %v5445_v27, %v1876_v29 }
 0x1f3   : > { %v1940_v38 = vmul.f32 %v5444_v32, %v1908_v34 }
 0x1f4   : > { %1949 = vadd.xlane.f32.xlu0 %v1929_v49  ;;  %v1990_v49 = vand.u32 127, %v1669_v43 }
 0x1f6   : > { %1965 = vadd.xlane.f32.xlu1 %v1937_v55  ;;  %v4967_v55 = vsub.s32 %v1990_v49, %v4805_v47 }
 0x1f8   : > { %1947 = vadd.xlane.f32.xlu0 %v1928_v0 }
 0x1fa   : > { %1963 = vadd.xlane.f32.xlu1 %v1936_v9 }
 0x1fc   : > { %1951 = vadd.xlane.f32.xlu0 %v1930_v14 }
 0x1fe   : > { %1967 = vadd.xlane.f32.xlu1 %v1938_v19 }
 0x200   : > { %1953 = vadd.xlane.f32.xlu0 %v1931_v25 }
 0x202   : > { %1969 = vadd.xlane.f32.xlu1 %v1939_v31 }
 0x204   : > { %1955 = vadd.xlane.f32.xlu0 %v1932_v36 }
 0x206   : > { %1971 = vadd.xlane.f32.xlu1 %v1940_v38 }
 0x275   : > { %v4947_v39 = vpop.xlane.xlu0 %1941 }
 0x276   : > { %v1994_v43 = vrot.slane %v4947_v39, %v4967_v55 }
 0x277   : > { %v4949_v40 = vpop.xlane.xlu1 %1957 }
 0x278   : > { %v2026_v14 = vrot.slane %v4949_v40, %v4967_v55 }
 0x279   : > { %v4951_v41 = vpop.xlane.xlu0 %1943 }
 0x27a   : > { %v1998_v62 = vrot.slane %v4951_v41, %v4967_v55 }
 0x27b   : > { %v4953_v44 = vpop.xlane.xlu1 %1959 }
 0x27c   : > { %v2030_v4 = vrot.slane %v4953_v44, %v4967_v55  ;;  %v2056_v16 = vsel %vm2055_vm1, %v1998_v62, %v1994_v43 }
 0x27d   : > { %v4955_v45 = vpop.xlane.xlu0 %1945 }
 0x27e   : > { %v2002_v0 = vrot.slane %v4955_v45, %v4967_v55  ;;  %v2069_v24 = vsel %vm2055_vm1, %v2030_v4, %v2026_v14 }
 0x27f   : > { %v4957_v46 = vpop.xlane.xlu1 %1961 }
 0x280   : > { %v2034_v11 = vrot.slane %v4957_v46, %v4967_v55  ;;  %v2058_v19 = vsel %vm2057_vm2, %v2002_v0, %v2056_v16 }
 0x281   : > { %v4959_v18 = vpop.xlane.xlu0 %1949 }
 0x282   : > { %v2070_v31 = vsel %vm2057_vm2, %v2034_v11, %v2069_v24  ;;  %v2010_v34 = vrot.slane %v4959_v18, %v4967_v55 }
 0x283   : > { %v4962_v52 = vpop.xlane.xlu1 %1965 }
 0x284   : > { %v2042_v0 = vrot.slane %v4962_v52, %v4967_v55 }
 0x285   : > { %v4964_v54 = vpop.xlane.xlu0 %1947 }
 0x286   : > { %v2006_v9 = vrot.slane %v4964_v54, %v4967_v55 }
 0x287   : > { %v4969_v59 = vpop.xlane.xlu1 %1963 }
 0x288   : > { %v2038_v17 = vrot.slane %v4969_v59, %v4967_v55  ;;  %v2060_v25 = vsel %vm2059_vm3, %v2006_v9, %v2058_v19 }
 0x289   : > { %v4975_v2 = vpop.xlane.xlu0 %1951  ;;  %v2062_v9 = vsel %vm2061_vm4, %v2010_v34, %v2060_v25 }
 0x28a   : > { %v2014_v29 = vrot.slane %v4975_v2, %v4967_v55  ;;  %v2071_v49 = vsel %vm2059_vm3, %v2038_v17, %v2070_v31 }
 0x28b   : > { %v4985_v53 = vpop.xlane.xlu1 %1967  ;;  %v2072_v19 = vsel %vm2061_vm4, %v2042_v0, %v2071_v49  ;;  %v5037_v0 = vsub.s32 4, %v4805_v47 }
 0x28c   : > { %v2046_v62 = vrot.slane %v4985_v53, %v4967_v55  ;;  %v2064_v14 = vsel %vm2063_vm5, %v2014_v29, %v2062_v9 }
 0x28d   : > { %v4993_v23 = vpop.xlane.xlu0 %1953 }
 0x28e   : > { %v2018_v36 = vrot.slane %v4993_v23, %v4967_v55  ;;  %v2073_v6 = vsel %vm2063_vm5, %v2046_v62, %v2072_v19 }
 0x28f   : > { %v5004_v38 = vpop.xlane.xlu1 %1969 }
 0x290   : > { %v2050_v43 = vrot.slane %v5004_v38, %v4967_v55  ;;  %v2066_v17 = vsel %vm2065_vm6, %v2018_v36, %v2064_v14 }
 0x291   : > { %v5013_v4 = vpop.xlane.xlu0 %1955 }
 0x292   : > { %v2022_v11 = vrot.slane %v5013_v4, %v4967_v55  ;;  %v2074_v34 = vsel %vm2065_vm6, %v2050_v43, %v2073_v6 }
 0x293   : > { %v1972_v16 = vpop.xlane.xlu1 %1971 }
 0x294   : > { %v2054_v24 = vrot.slane %v1972_v16, %v4967_v55  ;;  %v2068_v31 = vsel %vm2067_vm7, %v2022_v11, %v2066_v17 }
 0x295   : > { %v2079_v25 = vsel %vm2078_vm8, %v2068_v31, -inf }
 0x296   : > { %2080 = vmax.xlane.f32.xlu0 %v2079_v25  ;;  %v2075_v32 = vsel %vm2067_vm7, %v2054_v24, %v2074_v34  ;;  %v5047_v24 = vsub.s32 5, %v4805_v47 }
 0x297   : > { %v2082_v29 = vsel %vm2078_vm8, %v2075_v32, -inf }
 0x298   : > { %2083 = vmax.xlane.f32.xlu1 %v2082_v29 }
 0x323   : > { %v5028_v9 = vpop.xlane.xlu0 %2080 }
 0x324   : > { %v2090_v36 = vrot.slane %v5028_v9, %v4808_v48  ;;  %v2094_v49 = vrot.slane %v5028_v9, %v4812_v50  ;;  %v2098_v62 = vrot.slane %v5028_v9, %v4817_v5  ;;  %v2102_v32 = vrot.slane %v5028_v9, %v4821_v7 }
 0x325   : > { %v5044_v19 = vpop.xlane.xlu1 %2083  ;;  %v2106_v31 = vrot.slane %v5028_v9, %v5037_v0 }
 0x326   : > { %v2167_v6 = vsub.f32 %v4947_v39, %v2090_v36  ;;  %v2168_v43 = vsub.f32 %v4951_v41, %v2094_v49  ;;  %v2169_v11 = vsub.f32 %v4955_v45, %v2098_v62  ;;  %v2170_v39 = vsub.f32 %v4964_v54, %v2102_v32 }
 0x327   : > { %v2138_v25 = vrot.slane %v5044_v19, %v5037_v0  ;;  %v5055_v45 = vsub.s32 6, %v4805_v47  ;;  %v2142_v34 = vrot.slane %v5044_v19, %v5047_v24  ;;  %v2110_v36 = vrot.slane %v5028_v9, %v5047_v24 }
 0x328   : > { %v2183_v14 = vmul.f32 1.442695, %v2167_v6  ;;  %v2185_v17 = vmul.f32 1.442695, %v2168_v43  ;;  %v2187_v41 = vmul.f32 1.442695, %v2169_v11  ;;  %v2171_v49 = vsub.f32 %v4959_v18, %v2106_v31 }
 0x329   : > { %v2179_v29 = vsub.f32 %v4962_v52, %v2138_v25  ;;  %v2189_v54 = vmul.f32 1.442695, %v2170_v39  ;;  %v2146_v62 = vrot.slane %v5044_v19, %v5055_v45  ;;  %v2180_v6 = vsub.f32 %v4985_v53, %v2142_v34 }
 0x32a   : > { %4134 = vpow2.f32 %v2183_v14  ;;  %v2114_v32 = vrot.slane %v5028_v9, %v5055_v45  ;;  %v2172_v11 = vsub.f32 %v4975_v2, %v2110_v36  ;;  %v2191_v52 = vmul.f32 1.442695, %v2171_v49 }
 0x32b   : > { %4136 = vpow2.f32 %v2185_v17  ;;  %v2207_v43 = vmul.f32 1.442695, %v2179_v29  ;;  %v5072_v17 = vsub.s32 7, %v4805_v47  ;;  %v2181_v31 = vsub.f32 %v5004_v38, %v2146_v62 }
 0x32c   : > { %4138 = vpow2.f32 %v2187_v41  ;;  %v2209_v39 = vmul.f32 1.442695, %v2180_v6  ;;  %v2173_v2 = vsub.f32 %v4993_v23, %v2114_v32  ;;  %v2193_v41 = vmul.f32 1.442695, %v2172_v11 }
 0x32d   : > { %4140 = vpow2.f32 %v2189_v54  ;;  %v2150_v53 = vrot.slane %v5044_v19, %v5072_v17  ;;  %v2122_v47 = vrot.slane %v5044_v19, %v4808_v48  ;;  %v2211_v29 = vmul.f32 1.442695, %v2181_v31 }
 0x32e   : > { %4142 = vpow2.f32 %v2207_v43  ;;  %v2195_v38 = vmul.f32 1.442695, %v2173_v2  ;;  %v2126_v36 = vrot.slane %v5044_v19, %v4812_v50  ;;  %v2118_v31 = vrot.slane %v5028_v9, %v5072_v17 }
 0x32f   : > { %4144 = vpow2.f32 %v2191_v52  ;;  %v2182_v34 = vsub.f32 %v1972_v16, %v2150_v53  ;;  %v2175_v49 = vsub.f32 %v4949_v40, %v2122_v47  ;;  %v2130_v16 = vrot.slane %v5044_v19, %v4817_v5 }
 0x330   : > { %4146 = vpow2.f32 %v2209_v39  ;;  %v2176_v62 = vsub.f32 %v4953_v44, %v2126_v36  ;;  %v2134_v40 = vrot.slane %v5044_v19, %v4821_v7 }
 0x331   : > { %4148 = vpow2.f32 %v2193_v41  ;;  %v2213_v54 = vmul.f32 1.442695, %v2182_v34  ;;  %v2199_v6 = vmul.f32 1.442695, %v2175_v49  ;;  %v2177_v11 = vsub.f32 %v4957_v46, %v2130_v16 }
 0x332   : > { %4150 = vpow2.f32 %v2211_v29  ;;  %v2201_v52 = vmul.f32 1.442695, %v2176_v62  ;;  %v2178_v39 = vsub.f32 %v4969_v59, %v2134_v40  ;;  %v2174_v41 = vsub.f32 %v5013_v4, %v2118_v31 }
 0x333   : > { %4152 = vpow2.f32 %v2195_v38  ;;  %v2203_v2 = vmul.f32 1.442695, %v2177_v11 }
 0x334   : > { %v5069_v14 = vpop.eup %4134  ;;  %4154 = vpow2.f32 %v2213_v54  ;;  %v2205_v47 = vmul.f32 1.442695, %v2178_v39  ;;  %v2197_v59 = vmul.f32 1.442695, %v2174_v41 }
 0x335   : > { %v5074_v18 = vpop.eup %4136  ;;  %2232 = vperm.xlu0 %3964, %v5069_v14   ;;  %4156 = vpow2.f32 %v2199_v6 }
 0x336   : > { %2235 = vperm.xlu1 %3965, %v5074_v18   ;;  %v5084_v25 = vpop.eup %4138  ;;  %4158 = vpow2.f32 %v2201_v52 }
 0x337   : > { %v5090_v23 = vpop.eup %4140  ;;  %4160 = vpow2.f32 %v2203_v2 }
 0x338   : > { %v5096_v43 = vpop.eup %4142  ;;  %4162 = vpow2.f32 %v2205_v47 }
 0x339   : > { %v5098_v32 = vpop.eup %4144  ;;  %2268 = vperm.xlu0 %3964, %v5096_v43   ;;  %4164 = vpow2.f32 %v2197_v59 }
 0x33a   : > { %2238 = vperm.xlu1 %3965, %v5084_v25   ;;  %v5105_v53 = vpop.eup %4146 }
 0x33b   : > { %v5107_v44 = vpop.eup %4148 }
 0x33c   : > { %v5114_v19 = vpop.eup %4150 }
 0x33d   : > { %2271 = vperm.xlu0 %3964, %v5105_v53   ;;  %v5116_v46 = vpop.eup %4152 }
 0x33e   : > { %2241 = vperm.xlu1 %3965, %v5090_v23   ;;  %v5121_v34 = vpop.eup %4154 }
 0x33f   : > { %v5123_v29 = vpop.eup %4156 }
 0x340   : > { %v5127_v9 = vpop.eup %4158 }
 0x341   : > { %2274 = vperm.xlu0 %3964, %v5114_v19   ;;  %v5130_v38 = vpop.eup %4160 }
 0x342   : > { %2244 = vperm.xlu1 %3965, %v5098_v32   ;;  %v5133_v4 = vpop.eup %4162 }
 0x343   : > { %v5136_v36 = vpop.eup %4164 }
 0x345   : > { %2277 = vperm.xlu0 %3964, %v5121_v34  }
 0x346   : > { %2247 = vperm.xlu1 %3965, %v5107_v44  }
 0x34a   : > { %2250 = vperm.xlu1 %3965, %v5116_v46  }
 0x34e   : > { %2256 = vperm.xlu1 %3965, %v5123_v29  }
 0x352   : > { %2259 = vperm.xlu1 %3965, %v5127_v9  }
 0x356   : > { %2262 = vperm.xlu1 %3965, %v5130_v38  }
 0x35a   : > { %2265 = vperm.xlu1 %3965, %v5133_v4  }
 0x35e   : > { %2253 = vperm.xlu1 %3965, %v5136_v36  }
 0x3b4   : > { %v2233_v6 = vpop.permute.xlu0 %2232 }
 0x3b5   : > { %v2236_v49 = vpop.permute.xlu1 %2235  ;;  %v2282_v27 = vrot.slane %v2233_v6, %v4967_v55 }
 0x3b6   : > { %v2286_v59 = vrot.slane %v2236_v49, %v4967_v55 }
 0x3b8   : > { %v2269_v11 = vpop.permute.xlu0 %2268  ;;  %v2343_v37 = vsel %vm2055_vm1, %v2286_v59, %v2282_v27 }
 0x3b9   : > { %v2239_v54 = vpop.permute.xlu1 %2238 }
 0x3ba   : > { %v2290_v15 = vrot.slane %v2239_v54, %v4967_v55  ;;  %v2330_v54 = vrot.slane %v2269_v11, %v4967_v55 }
 0x3bc   : > { %v2272_v39 = vpop.permute.xlu0 %2271 }
 0x3bd   : > { %v2242_v16 = vpop.permute.xlu1 %2241  ;;  %v2334_v51 = vrot.slane %v2272_v39, %v4967_v55 }
 0x3be   : > { %v2294_v3 = vrot.slane %v2242_v16, %v4967_v55 }
 0x3c0   : > { %v2275_v41 = vpop.permute.xlu0 %2274 }
 0x3c1   : > { %v2245_v62 = vpop.permute.xlu1 %2244 }
 0x3c2   : > { %v2298_v1 = vrot.slane %v2245_v62, %v4967_v55 }
 0x3c5   : > { %v2248_v40 = vpop.permute.xlu1 %2247 }
 0x3c6   : > { %v2302_v33 = vrot.slane %v2248_v40, %v4967_v55 }
 0x3c9   : > { %v2251_v52 = vpop.permute.xlu1 %2250 }
 0x3ca   : > { %v2306_v16 = vrot.slane %v2251_v52, %v4967_v55 }
 0x3cd   : > { %v2257_v31 = vpop.permute.xlu1 %2256 }
 0x3ce   : > { %v2314_v42 = vrot.slane %v2257_v31, %v4967_v55 }
 0x3d1   : > { %v2260_v2 = vpop.permute.xlu1 %2259 }
 0x3d2   : > { %v2318_v22 = vrot.slane %v2260_v2, %v4967_v55  ;;  %v2344_v2 = vsel %vm2057_vm2, %v2290_v15, %v2343_v37 }
 0x3d3   : > { %v2345_v62 = vsel %vm2059_vm3, %v2294_v3, %v2344_v2 }
 0x3d4   : > { %v2350_v49 = vsel %vm2055_vm1, %v2318_v22, %v2314_v42  ;;  %v2346_v40 = vsel %vm2061_vm4, %v2298_v1, %v2345_v62  ;;  %v2338_v42 = vrot.slane %v2275_v41, %v4967_v55 }
 0x3d5   : > { %v2263_v47 = vpop.permute.xlu1 %2262  ;;  %v2347_v15 = vsel %vm2063_vm5, %v2302_v33, %v2346_v40 }
 0x3d6   : > { %v2322_v10 = vrot.slane %v2263_v47, %v4967_v55  ;;  %v2278_v47 = vpop.permute.xlu0 %2277  ;;  %v2348_v3 = vsel %vm2065_vm6, %v2306_v16, %v2347_v15 }
 0x3d7   : > { %v2342_v22 = vrot.slane %v2278_v47, %v4967_v55 }
 0x3d8   : > { %v2351_v31 = vsel %vm2057_vm2, %v2322_v10, %v2350_v49 }
 0x3d9   : > { %v2266_v57 = vpop.permute.xlu1 %2265 }
 0x3da   : > { %v2326_v6 = vrot.slane %v2266_v57, %v4967_v55 }
 0x3dc   : > { %v2352_v27 = vsel %vm2059_vm3, %v2326_v6, %v2351_v31 }
 0x3dd   : > { %v2353_v57 = vsel %vm2061_vm4, %v2330_v54, %v2352_v27  ;;  %v2254_v37 = vpop.permute.xlu1 %2253 }
 0x3de   : > { %v2310_v11 = vrot.slane %v2254_v37, %v4967_v55  ;;  %v2354_v10 = vsel %vm2063_vm5, %v2334_v51, %v2353_v57 }
 0x3df   : > { %v2355_v52 = vsel %vm2065_vm6, %v2338_v42, %v2354_v10 }
 0x3e0   : > { %v2349_v39 = vsel %vm2067_vm7, %v2310_v11, %v2348_v3  ;;  %v2356_v1 = vsel %vm2067_vm7, %v2342_v22, %v2355_v52 }
 0x3e1   : > { %v2359_v41 = vsel %vm2078_vm8, %v2349_v39, 0.0  ;;  %v2362_v59 = vsel %vm2078_vm8, %v2356_v1, 0.0 }
 0x3e2   : > { %2360 = vadd.xlane.f32.xlu1 %v2359_v41  ;;  %2363 = vadd.xlane.f32.xlu0 %v2362_v59 }
 0x46f   : > { %v2361_v33 = vpop.xlane.xlu1 %2360  ;;  %v2364_v49 = vpop.xlane.xlu0 %2363 }
 0x470   : > { %v2374_v6 = vrot.slane %v2361_v33, %v4812_v50  ;;  %v2370_v51 = vrot.slane %v2361_v33, %v4808_v48  ;;  %v2378_v2 = vrot.slane %v2361_v33, %v4817_v5  ;;  %v2406_v54 = vrot.slane %v2364_v49, %v4812_v50 }
 0x471   : > { %v2382_v47 = vrot.slane %v2361_v33, %v4821_v7  ;;  %v2410_v16 = vrot.slane %v2364_v49, %v4817_v5  ;;  %v2386_v31 = vrot.slane %v2361_v33, %v5037_v0  ;;  %v2414_v62 = vrot.slane %v2364_v49, %v4821_v7 }
 0x472   : > { %4166 = vrcp.f32 %v2374_v6  ;;  %v2390_v40 = vrot.slane %v2361_v33, %v5047_v24  ;;  %v2418_v57 = vrot.slane %v2364_v49, %v5037_v0  ;;  %v2402_v22 = vrot.slane %v2364_v49, %v4808_v48 }
 0x473   : > { %4168 = vrcp.f32 %v2370_v51  ;;  %v2422_v11 = vrot.slane %v2364_v49, %v5047_v24  ;;  %v2394_v0 = vrot.slane %v2361_v33, %v5055_v45  ;;  %v2426_v52 = vrot.slane %v2364_v49, %v5055_v45 }
 0x474   : > { %4170 = vrcp.f32 %v2378_v2  ;;  %v2398_v24 = vrot.slane %v2361_v33, %v5072_v17  ;;  %v2430_v1 = vrot.slane %v2364_v49, %v5072_v17 }
 0x475   : > { %4172 = vrcp.f32 %v2406_v54  ;;  %v4086_v54 = vld [vmem:[%s5514_s30 + $0x40] sm:$0xff]  }
 0x476   : > { %4174 = vrcp.f32 %v2382_v47  ;;  %3845 = vmatprep.subr.bf16.mxu0 %v4086_v54 }
 0x477   : > { %4176 = vrcp.f32 %v2410_v16  ;;  %v4091_v16 = vld [vmem:[%s5514_s30 + $0x10] sm:$0xff]  }
 0x478   : > { %4178 = vrcp.f32 %v2386_v31  ;;  %v4093_v31 = vld [vmem:[%s5514_s30 + $0x18] sm:$0xff]  }
 0x479   : > { %4180 = vrcp.f32 %v2414_v62  ;;  %v4094_v62 = vld [vmem:[%s5514_s30 + $0x60] sm:$0xff]  }
 0x47a   : > { %4182 = vrcp.f32 %v2390_v40  ;;  %v4096_v40 = vld [vmem:[%s5514_s30 + $0x68] sm:$0xff]  }
 0x47b   : > { %4184 = vrcp.f32 %v2418_v57  ;;  %v4099_v57 = vld [vmem:[%s5514_s30 + $0x30] sm:$0xff]  }
 0x47c   : > { %v4167_v27 = vpop.eup %4166  ;;  %4186 = vrcp.f32 %v2402_v22 }
 0x47d   : > { %v4169_v42 = vpop.eup %4168  ;;  %v2450_v50 = vmul.f32 %v4167_v27, %v5074_v18  ;;  %4188 = vrcp.f32 %v2422_v11  ;;  %v4095_v27 = vld [vmem:[%s5514_s30 + $0x20] sm:$0xff]  }
 0x47e   : > { %v4171_v37 = vpop.eup %4170  ;;  %v2448_v15 = vmul.f32 %v4169_v42, %v5069_v14  ;;  %4190 = vrcp.f32 %v2394_v0  ;;  %v4097_v42 = vld [vmem:[%s5514_s30 + $0x28] sm:$0xff]  }
 0x47f   : > { %v4173_v5 = vpop.eup %4172  ;;  %2486 = vperm.xlu1 %3965, %v2450_v50   ;;  %v2452_v7 = vmul.f32 %v4171_v37, %v5084_v25  ;;  %4192 = vrcp.f32 %v2426_v52  ;;  %v4098_v50 = vld [vmem:[%s5514_s30 + $0x70] sm:$0xff]   ;;  %v4100_v37 = vld [vmem:[%s5514_s30 + $0x78] sm:$0xff]  }
 0x480   : > { %2481 = vperm.xlu0 %3964, %v2448_v15   ;;  %v4175_v10 = vpop.eup %4174  ;;  %v2466_v18 = vmul.f32 %v4173_v5, %v5127_v9  ;;  %4194 = vrcp.f32 %v2398_v24  ;;  %v4101_v15 = vld [vmem:[%s5514_s30 + $0x38] sm:$0xff]  }
 0x481   : > { %v4177_v3 = vpop.eup %4176  ;;  %v2454_v14 = vmul.f32 %v4175_v10, %v5090_v23  ;;  %4196 = vrcp.f32 %v2430_v1 }
 0x482   : > { %v4179_v48 = vpop.eup %4178  ;;  %v2468_v25 = vmul.f32 %v4177_v3, %v5130_v38 }
 0x483   : > { %2491 = vperm.xlu1 %3965, %v2452_v7   ;;  %v4181_v39 = vpop.eup %4180  ;;  %v2456_v9 = vmul.f32 %v4179_v48, %v5098_v32 }
 0x484   : > { %2526 = vperm.xlu0 %3964, %v2466_v18   ;;  %v4183_v41 = vpop.eup %4182  ;;  %v2470_v23 = vmul.f32 %v4181_v39, %v5133_v4 }
 0x485   : > { %v4185_v59 = vpop.eup %4184  ;;  %v2458_v45 = vmul.f32 %v4183_v41, %v5107_v44 }
 0x486   : > { %v4187_v38 = vpop.eup %4186  ;;  %v2472_v6 = vmul.f32 %v4185_v59, %v5096_v43 }
 0x487   : > { %2496 = vperm.xlu1 %3965, %v2454_v14   ;;  %v4189_v51 = vpop.eup %4188  ;;  %v2464_v17 = vmul.f32 %v4187_v38, %v5123_v29  ;;  %v5516_v38 = vunpack.c.l.bf16 %v4877_v26 }
 0x488   : > { %2531 = vperm.xlu0 %3964, %v2468_v25   ;;  %v4191_v32 = vpop.eup %4190  ;;  %v2474_v4 = vmul.f32 %v4189_v51, %v5105_v53  ;;  %v4087_v53 = vld [vmem:[%s5514_s30] sm:$0xff]  }
 0x489   : > { %v4193_v33 = vpop.eup %4192  ;;  %v2460_v44 = vmul.f32 %v4191_v32, %v5116_v46  ;;  %3846 = vmatpush3.bf16.msra.mxu0 %v4087_v53  ;;  %v4089_v46 = vld [vmem:[%s5514_s30 + $0x8] sm:$0xff]  }
 0x48a   : > { %v4195_v49 = vpop.eup %4194  ;;  %v2476_v43 = vmul.f32 %v4193_v33, %v5114_v19  ;;  %v4088_v19 = vld [vmem:[%s5514_s30 + $0x48] sm:$0xff]  }
 0x48b   : > { %2501 = vperm.xlu1 %3965, %v2456_v9   ;;  %v4197_v2 = vpop.eup %4196  ;;  %v2462_v29 = vmul.f32 %v4195_v49, %v5136_v36  ;;  %3847 = vmatprep.subr.bf16.mxu0 %v4088_v19  ;;  %v4090_v36 = vld [vmem:[%s5514_s30 + $0x50] sm:$0xff]  }
 0x48c   : > { %2536 = vperm.xlu0 %3964, %v2470_v23   ;;  %v2478_v47 = vmul.f32 %v4197_v2, %v5121_v34  ;;  %v4092_v34 = vld [vmem:[%s5514_s30 + $0x58] sm:$0xff]   ;;  %v5515_v23 = vunpack.c.h.bf16 %v4870_v21 }
 0x48d   : > { %3848 = vmatpush3.bf16.msra.mxu0 %v4089_v46 }
 0x48e   : > { %3849 = vmatprep.subr.bf16.mxu0 %v4090_v36 }
 0x48f   : > { %2506 = vperm.xlu1 %3965, %v2458_v45  }
 0x490   : > { %2541 = vperm.xlu0 %3964, %v2472_v6  }
 0x491   : > { %3850 = vmatpush3.bf16.msra.mxu0 %v4091_v16 }
 0x492   : > { %3851 = vmatprep.subr.bf16.mxu0 %v4092_v34 }
 0x493   : > { %2521 = vperm.xlu1 %3965, %v2464_v17  }
 0x494   : > { %2546 = vperm.xlu0 %3964, %v2474_v4  }
 0x495   : > { %3852 = vmatpush3.bf16.msra.mxu0 %v4093_v31 }
 0x496   : > { %3853 = vmatprep.subr.bf16.mxu0 %v4094_v62  ;;  %v5518_v62 = vunpack.c.h.bf16 %v4877_v26  ;;  %v5519_v26 = vunpack.c.h.bf16 %v4884_v30 }
 0x497   : > { %2511 = vperm.xlu1 %3965, %v2460_v44  }
 0x498   : > { %2551 = vperm.xlu0 %3964, %v2476_v43  }
 0x499   : > { %3854 = vmatpush3.bf16.msra.mxu0 %v4095_v27 }
 0x49a   : > { %3855 = vmatprep.subr.bf16.mxu0 %v4096_v40 }
 0x49b   : > { %2516 = vperm.xlu1 %3965, %v2462_v29   ;;  %v5517_v29 = vunpack.c.l.bf16 %v4884_v30 }
 0x49c   : > { %2556 = vperm.xlu0 %3964, %v2478_v47  }
 0x49d   : > { %3856 = vmatpush3.bf16.msra.mxu0 %v4097_v42 }
 0x49e   : > { %3857 = vmatprep.subr.bf16.mxu0 %v4098_v50 }
 0x4a1   : > { %3858 = vmatpush3.bf16.msra.mxu0 %v4099_v57 }
 0x4a2   : > { %3859 = vmatprep.subr.bf16.mxu0 %v4100_v37 }
 0x4a5   : > { %3860 = vmatpush3.bf16.msra.mxu0 %v4101_v15 }
 0x4fe   : > { %v2487_v5 = vpop.permute.xlu1 %2486 }
 0x4ff   : > { %v2560_v22 = vmul.f32 %v3809_v12, %v2487_v5  ;;  %v2482_v7 = vpop.permute.xlu0 %2481  ;;  %v2890_v24 = vrot.slane %v2487_v5, %v4967_v55 }
 0x500   : > { %v2559_v11 = vmul.f32 %v3808_v63, %v2482_v7  ;;  %v2886_v63 = vrot.slane %v2482_v7, %v4967_v55 }
 0x501   : > { %v2581_v10 = vrot.slane %v2560_v22, 4 }
 0x502   : > { %v2575_v18 = vrot.slane %v2559_v11, 4  ;;  %v2492_v3 = vpop.permute.xlu1 %2491  ;;  %v2947_v4 = vsel %vm2055_vm1, %v2890_v24, %v2886_v63 }
 0x503   : > { %v2582_v0 = vadd.f32 %v2581_v10, %v2560_v22  ;;  %v2561_v14 = vmul.f32 %v3812_v28, %v2492_v3  ;;  %v5225_v52 = vpop.permute.xlu0 %2526  ;;  %v2894_v21 = vrot.slane %v2492_v3, %v4967_v55 }
 0x504   : > { %v2576_v48 = vadd.f32 %v2575_v18, %v2559_v11  ;;  %v2568_v25 = vmul.f32 %v3825_v20, %v5225_v52  ;;  %v2922_v19 = vrot.slane %v5225_v52, %v4967_v55 }
 0x505   : > { %v2583_v39 = vrot.slane %v2582_v0, 2  ;;  %v2587_v12 = vrot.slane %v2561_v14, 4  ;;  %v2948_v10 = vsel %vm2057_vm2, %v2894_v21, %v2947_v4 }
 0x506   : > { %v2577_v58 = vrot.slane %v2576_v48, 2  ;;  %v2629_v9 = vrot.slane %v2568_v25, 4  ;;  %v2497_v1 = vpop.permute.xlu1 %2496 }
 0x507   : > { %v2588_v41 = vadd.f32 %v2587_v12, %v2561_v14  ;;  %v2562_v28 = vmul.f32 %v5515_v23, %v2497_v1  ;;  %v5234_v59 = vpop.permute.xlu0 %2531  ;;  %v2584_v6 = vadd.f32 %v2583_v39, %v2582_v0  ;;  %v2898_v46 = vrot.slane %v2497_v1, %v4967_v55 }
 0x508   : > { %v2630_v45 = vadd.f32 %v2629_v9, %v2568_v25  ;;  %v2569_v20 = vmul.f32 %v5516_v38, %v5234_v59  ;;  %v2578_v32 = vadd.f32 %v2577_v58, %v2576_v48  ;;  %v2926_v3 = vrot.slane %v5234_v59, %v4967_v55 }
 0x509   : > { %v2589_v51 = vrot.slane %v2588_v41, 2  ;;  %v2593_v17 = vrot.slane %v2562_v28, 4  ;;  %v2585_v16 = vrot.slane %v2584_v6, 1  ;;  %v2949_v48 = vsel %vm2059_vm3, %v2898_v46, %v2948_v10 }
 0x50a   : > { %v2631_v33 = vrot.slane %v2630_v45, 2  ;;  %v2635_v44 = vrot.slane %v2569_v20, 4  ;;  %v2502_v49 = vpop.permute.xlu1 %2501  ;;  %v2579_v40 = vrot.slane %v2578_v32, 1  ;;  %v5520_v58 = vunpack.c.l.bf16 %v4892_v35 }
 0x50b   : > { %v2590_v43 = vadd.f32 %v2589_v51, %v2588_v41  ;;  %v2594_v2 = vadd.f32 %v2593_v17, %v2562_v28  ;;  %v2563_v54 = vmul.f32 %v5517_v29, %v2502_v49  ;;  %v5243_v53 = vpop.permute.xlu0 %2536  ;;  %v2902_v57 = vrot.slane %v2502_v49, %v4967_v55 }
 0x50c   : > { %v2632_v47 = vadd.f32 %v2631_v33, %v2630_v45  ;;  %v2636_v36 = vadd.f32 %v2635_v44, %v2569_v20  ;;  %v2570_v27 = vmul.f32 %v5518_v62, %v5243_v53  ;;  %v5257_v14 = vadd.f32 %v2585_v16, %v2584_v6 }
 0x50d   : > { %v2595_v34 = vrot.slane %v2594_v2, 2  ;;  %v2599_v31 = vrot.slane %v2563_v54, 4  ;;  %v2591_v42 = vrot.slane %v2590_v43, 1  ;;  %v5260_v39 = vadd.f32 %v2579_v40, %v2578_v32 }
 0x50e   : > { %v2637_v50 = vrot.slane %v2636_v36, 2  ;;  %v2507_v37 = vpop.permute.xlu1 %2506  ;;  %v2633_v15 = vrot.slane %v2632_v47, 1  ;;  %v2641_v7 = vrot.slane %v2570_v27, 4  ;;  %v2950_v12 = vsel %vm2061_vm4, %v2902_v57, %v2949_v48 }
 0x50f   : > { %v2596_v5 = vadd.f32 %v2595_v34, %v2594_v2  ;;  %v2600_v22 = vadd.f32 %v2599_v31, %v2563_v54  ;;  %v2542_v11 = vpop.permute.xlu0 %2541  ;;  %v2564_v0 = vmul.f32 %v5519_v26, %v2507_v37  ;;  %v5265_v1 = vadd.f32 %v2591_v42, %v2590_v43 }
 0x510   : > { %v2638_v18 = vadd.f32 %v2637_v50, %v2636_v36  ;;  %v2642_v25 = vadd.f32 %v2641_v7, %v2570_v27  ;;  %v2571_v63 = vmul.f32 %v5520_v58, %v2542_v11  ;;  %v5267_v41 = vadd.f32 %v2633_v15, %v2632_v47 }
 0x511   : > { %v2597_v52 = vrot.slane %v2596_v5, 1  ;;  %v2605_v24 = vrot.slane %v2564_v0, 4  ;;  %v2601_v30 = vrot.slane %v2600_v22, 2  ;;  %v2930_v45 = vrot.slane %v5243_v53, %v4967_v55 }
 0x512   : > { %v2522_v9 = vpop.permute.xlu1 %2521  ;;  %v2643_v23 = vrot.slane %v2642_v25, 2  ;;  %v2639_v59 = vrot.slane %v2638_v18, 1  ;;  %v2647_v20 = vrot.slane %v2571_v63, 4  ;;  %v2906_v17 = vrot.slane %v2507_v37, %v4967_v55 }
 0x513   : > { %v2547_v28 = vpop.permute.xlu0 %2546  ;;  %v2606_v38 = vadd.f32 %v2605_v24, %v2564_v0  ;;  %v5271_v6 = vadd.f32 %v2597_v52, %v2596_v5  ;;  %v5521_v32 = vunpack.c.l.bf16 %v4841_v60  ;;  %v2918_v49 = vrot.slane %v2522_v9, %v4967_v55 }
 0x514   : > { %v2644_v51 = vadd.f32 %v2643_v23, %v2642_v25  ;;  %v2648_v44 = vadd.f32 %v2647_v20, %v2571_v63  ;;  %v5522_v43 = vunpack.c.h.bf16 %v4892_v35  ;;  %v2602_v29 = vadd.f32 %v2601_v30, %v2600_v22 }
 0x515   : > { %v2567_v4 = vmul.f32 %v5521_v32, %v2522_v9  ;;  %v2607_v33 = vrot.slane %v2606_v38, 2  ;;  %v2934_v53 = vrot.slane %v2542_v11, %v4967_v55  ;;  %v2954_v34 = vsel %vm2055_vm1, %v2922_v19, %v2918_v49 }
 0x516   : > { %v2572_v21 = vmul.f32 %v5522_v43, %v2547_v28  ;;  %v2512_v2 = vpop.permute.xlu1 %2511  ;;  %v2645_v54 = vrot.slane %v2644_v51, 1  ;;  %v2649_v16 = vrot.slane %v2648_v44, 2  ;;  %v2640_v31 = vadd.f32 %v2639_v59, %v2638_v18 }
 0x517   : > { %v2623_v47 = vrot.slane %v2567_v4, 4  ;;  %v2552_v46 = vpop.permute.xlu0 %2551  ;;  %v2608_v36 = vadd.f32 %v2607_v33, %v2606_v38  ;;  %v2955_v27 = vsel %vm2057_vm2, %v2926_v3, %v2954_v34  ;;  %v5523_v40 = vunpack.c.l.bf16 %v4918_v8 }
 0x518   : > { %v2653_v60 = vrot.slane %v2572_v21, 4  ;;  %v2951_v42 = vsel %vm2063_vm5, %v2906_v17, %v2950_v12  ;;  %v2650_v50 = vadd.f32 %v2649_v16, %v2648_v44  ;;  %v2956_v57 = vsel %vm2059_vm3, %v2930_v45, %v2955_v27 }
 0x519   : > { %v2624_v62 = vadd.f32 %v2623_v47, %v2567_v4  ;;  %v2565_v35 = vmul.f32 %v5523_v40, %v2512_v2  ;;  %v2603_v15 = vrot.slane %v2602_v29, 1  ;;  %v2938_v22 = vrot.slane %v2547_v28, %v4967_v55 }
 0x51a   : > { %v2654_v37 = vadd.f32 %v2653_v60, %v2572_v21  ;;  %v2517_v19 = vpop.permute.xlu1 %2516  ;;  %v2646_v11 = vadd.f32 %v2645_v54, %v2644_v51  ;;  %v2609_v10 = vrot.slane %v2608_v36, 1  ;;  %v2910_v3 = vrot.slane %v2512_v2, %v4967_v55 }
 0x51b   : > { %v2625_v5 = vrot.slane %v2624_v62, 2  ;;  %v2611_v7 = vrot.slane %v2565_v35, 4  ;;  %v2957_v0 = vsel %vm2061_vm4, %v2934_v53, %v2956_v57  ;;  %v5524_v48 = vunpack.c.l.bf16 %v4925_v13  ;;  %v2557_v12 = vpop.permute.xlu0 %2556 }
 0x51c   : > { %v2655_v18 = vrot.slane %v2654_v37, 2  ;;  %v2651_v24 = vrot.slane %v2650_v50, 1  ;;  %v2942_v63 = vrot.slane %v2552_v46, %v4967_v55  ;;  %v5525_v9 = vunpack.c.h.bf16 %v4918_v8 }
 0x51d   : > { %v2626_v26 = vadd.f32 %v2625_v5, %v2624_v62  ;;  %v2612_v52 = vadd.f32 %v2611_v7, %v2565_v35  ;;  %v2573_v25 = vmul.f32 %v5524_v48, %v2552_v46  ;;  %v2914_v45 = vrot.slane %v2517_v19, %v4967_v55 }
 0x51e   : > { %v2656_v58 = vadd.f32 %v2655_v18, %v2654_v37  ;;  %v2566_v30 = vmul.f32 %v5525_v9, %v2517_v19  ;;  %v2958_v38 = vsel %vm2063_vm5, %v2938_v22, %v2957_v0  ;;  %v2952_v20 = vsel %vm2065_vm6, %v2910_v3, %v2951_v42 }
 0x51f   : > { %v2627_v23 = vrot.slane %v2626_v26, 1  ;;  %v2613_v28 = vrot.slane %v2612_v52, 2  ;;  %v2659_v59 = vrot.slane %v2573_v25, 4  ;;  %v5526_v17 = vunpack.c.h.bf16 %v4925_v13 }
 0x520   : > { %v2617_v51 = vrot.slane %v2566_v30, 4  ;;  %v2953_v8 = vsel %vm2067_vm7, %v2914_v45, %v2952_v20  ;;  %v2657_v49 = vrot.slane %v2656_v58, 1  ;;  %v2946_v2 = vrot.slane %v2557_v12, %v4967_v55 }
 0x521   : > { %v2574_v32 = vmul.f32 %v5526_v17, %v2557_v12  ;;  %v2628_v4 = vadd.f32 %v2627_v23, %v2626_v26  ;;  %v2614_v33 = vadd.f32 %v2613_v28, %v2612_v52  ;;  %v2660_v44 = vadd.f32 %v2659_v59, %v2573_v25  ;;  %2963 = vst.msk [vmem:[%s4683_s23] sm:$0xff] %vm2078_vm8, %v2953_v8 }
 0x522   : > { %v2618_v43 = vadd.f32 %v2617_v51, %v2566_v30  ;;  %v2959_v13 = vsel %vm2065_vm6, %v2942_v63, %v2958_v38  ;;  %v2604_v62 = vadd.f32 %v2603_v15, %v2602_v29  ;;  %v2652_v27 = vadd.f32 %v2651_v24, %v2650_v50  ;;  %v3753_v24 = vld [vmem:[%s5529_s11] ss:$0 sm:$0xff] }
 0x523   : > { %v2665_v21 = vrot.slane %v2574_v32, 4  ;;  %v2694_v54 = vsel %vm2055_vm1, %v5267_v41, %v2628_v4  ;;  %v2615_v53 = vrot.slane %v2614_v33, 1  ;;  %v2661_v47 = vrot.slane %v2660_v44, 2 }
 0x524   : > { %v2695_v46 = vsel %vm2057_vm2, %v2640_v31, %v2694_v54  ;;  %v2619_v16 = vrot.slane %v2618_v43, 2  ;;  %v2960_v60 = vsel %vm2067_vm7, %v2946_v2, %v2959_v13  ;;  %v2687_v41 = vsel %vm2055_vm1, %v5257_v14, %v5260_v39 }
 0x525   : > { %v2666_v34 = vadd.f32 %v2665_v21, %v2574_v32  ;;  %v2662_v40 = vadd.f32 %v2661_v47, %v2660_v44  ;;  %2964 = vst.msk [vmem:[%s4683_s23 + $0x8] sm:$0xff] %vm2078_vm8, %v2960_v60  ;;  %v2696_v55 = vsel %vm2059_vm3, %v2646_v11, %v2695_v46  ;;  %v2610_v35 = vadd.f32 %v2609_v10, %v2608_v36 }
 0x526   : > { %v2620_v42 = vadd.f32 %v2619_v16, %v2618_v43  ;;  %v2688_v31 = vsel %vm2057_vm2, %v5265_v1, %v2687_v41  ;;  %v2616_v37 = vadd.f32 %v2615_v53, %v2614_v33  ;;  %v2697_v29 = vsel %vm2061_vm4, %v2652_v27, %v2696_v55 }
 0x527   : > { %v2667_v57 = vrot.slane %v2666_v34, 2  ;;  %v2663_v5 = vrot.slane %v2662_v40, 1  ;;  %v2689_v50 = vsel %vm2059_vm3, %v5271_v6, %v2688_v31  ;;  %v2658_v15 = vadd.f32 %v2657_v49, %v2656_v58 }
 0x528   : > { %v2621_v22 = vrot.slane %v2620_v42, 1  ;;  %v2690_v11 = vsel %vm2061_vm4, %v2604_v62, %v2689_v50  ;;  %v5527_v52 = vpack.c.bf16 %v4843_v61, %v4831_v56  ;;  %v4361_v48 = vmov -inf  }
 0x529   : > { %v2668_v7 = vadd.f32 %v2667_v57, %v2666_v34  ;;  %v2664_v19 = vadd.f32 %v2663_v5, %v2662_v40  ;;  %v2691_v36 = vsel %vm2063_vm5, %v2610_v35, %v2690_v11  ;;  %v2698_v10 = vsel %vm2063_vm5, %v2658_v15, %v2697_v29  ;;  %2974 = vst.msk [vmem:[#allocation3] sm:$0xff] %vm2973_vm9, %v4361_v48 }
 0x52a   : > { %v2622_v14 = vadd.f32 %v2621_v22, %v2620_v42  ;;  %v2692_v1 = vsel %vm2065_vm6, %v2616_v37, %v2691_v36  ;;  %2975 = vst.msk [vmem:[#allocation3 + $0x8] sm:$0xff] %vm2973_vm9, %v4361_v48  ;;  %v4362_v25 = vmov 0.0  }
 0x52b   : > { %v2669_v39 = vrot.slane %v2668_v7, 1  ;;  %v2699_v6 = vsel %vm2065_vm6, %v2664_v19, %v2698_v10  ;;  %2976 = vst.msk [vmem:[#allocation4] sm:$0xff] %vm2973_vm9, %v4362_v25  ;;  %2977 = vst.msk [vmem:[#allocation4 + $0x8] sm:$0xff] %vm2973_vm9, %v4362_v25 }
 0x52c   : > { %v2693_v3 = vsel %vm2067_vm7, %v2622_v14, %v2692_v1 }
 0x52d   : > { %v2670_v18 = vadd.f32 %v2669_v39, %v2668_v7 }
 0x52f   : > { %v2700_v26 = vsel %vm2067_vm7, %v2670_v18, %v2699_v6 }
 0x530   : > { %v2704_v0 = vpack.c.bf16 %v2700_v26, %v2693_v3 }
 0x532   : > { %2872 = vmatprep.mubr.bf16.mxu0 %v2704_v0 }
 0x533   : > { %2873 = vmatmul.mubr.bf16.vlgmr.msra.gmra.mrb[4].mxu0 %v5527_v52 }
 0x606   : > { %v3861_v12 = vpop.f32.mrb[4].mxu0 }
 0x607   : > { %v3862_v58 = vpop.f32.mrb[5].mxu0 }
 0x608   : > { %v3863_v63 = vadd.f32 %v3862_v58, %v3861_v12  ;;  %v3864_v9 = vpop.f32.mrb[6].mxu0 }
 0x609   : > { %v3865_v56 = vpop.f32.mrb[7].mxu0 }
 0x60a   : > { %v2875_v61 = vadd.f32 %v3863_v63, %v3753_v24  ;;  %v3866_v30 = vadd.f32 %v3865_v56, %v3864_v9 }
 0x60c   : > { %4198 = vtanh.f32 %v2875_v61  ;;  %v2878_v23 = vadd.f32 %v3866_v30, %v3753_v24 }
 0x60e   : > { %4200 = vtanh.f32 %v2878_v23 }
 0x616   : > { %v4199_v28 = vpop.eup %4198 }
 0x617   : > { %2969 = vst [vmem:[%s4699_s26] sm:$0xff] %v4199_v28 }
 0x618   : > { %v4201_v59 = vpop.eup %4200 }
 0x619   : > { %2970 = vst [vmem:[%s4699_s26 + $0x8] sm:$0xff] %v4201_v59  ;;  %v2971_v45 = vpack.c.bf16 %v4201_v59, %v4199_v28 }
 0x61b   : > { %2972 = vst [vmem:[#allocation2] sm:$0xff] %v2971_v45 }
 0x61c PF: > { %v4204_v38 = vld [vmem:[%s4707_s8 + $0x4] ss:$8 sps:$4 sm:$0xff]   ;;  %v4206_v20 = vld [vmem:[%s4707_s8] ss:$8 sps:$4 sm:$0xff]   ;;  %v4363_v51 = vmov 0   ;;  %v2997_v16 = vlaneseq  ;;  %vm3184_vm10 = vcmask 7168  }
 0x61d   : > { %3119 = vmatprep.mubr.bf16.mxu0 %v4363_v51  ;;  %4202 = vset.pattern.permute.xlu1 %v4363_v51  ;;  %v4207_v17 = vld [vmem:[%s4707_s8 + $0x14] ss:$8 sps:$4 sm:$0xff]   ;;  %v4209_v32 = vld [vmem:[%s4707_s8 + $0x10] ss:$8 sps:$4 sm:$0xff]   ;;  %v4210_v4 = vld [vmem:[%s4707_s8 + $0x24] ss:$8 sps:$4 sm:$0xff]  }
 0x61e   : > { %3087 = vmatprep.subr.bf16.mxu0 %v4204_v38  ;;  %4203 = vset.pattern.permute.xlu0 %v4363_v51  ;;  %v4212_v33 = vld [vmem:[%s4707_s8 + $0x20] ss:$8 sps:$4 sm:$0xff]   ;;  %v4213_v44 = vld [vmem:[%s4707_s8 + $0x34] ss:$8 sps:$4 sm:$0xff]   ;;  %v4215_v8 = vld [vmem:[%s4707_s8 + $0x30] ss:$8 sps:$4 sm:$0xff]  }
 0x61f   : > { %3088 = vmatpush1.bf16.msra.mxu0 %v4206_v20  ;;  %v4216_v49 = vld [vmem:[%s4707_s8 + $0x44] ss:$8 sps:$4 sm:$0xff]   ;;  %v4218_v43 = vld [vmem:[%s4707_s8 + $0x40] ss:$8 sps:$4 sm:$0xff]   ;;  %v4219_v21 = vld [vmem:[%s4707_s8 + $0x54] ss:$8 sps:$4 sm:$0xff]  }
 0x620   : > { %3089 = vmatprep.subr.bf16.mxu0 %v4207_v17  ;;  %v4221_v2 = vld [vmem:[%s4707_s8 + $0x50] ss:$8 sps:$4 sm:$0xff]   ;;  %v4222_v54 = vld [vmem:[%s4707_s8 + $0x64] ss:$8 sps:$4 sm:$0xff]   ;;  %v4224_v53 = vld [vmem:[%s4707_s8 + $0x60] ss:$8 sps:$4 sm:$0xff]  }
 0x621   : > { %v4225_v47 = vld [vmem:[%s4707_s8 + $0x74] ss:$8 sps:$4 sm:$0xff]   ;;  %v4227_v13 = vld [vmem:[%s4707_s8 + $0x70] ss:$8 sps:$4 sm:$0xff]   ;;  %v2998_v34 = vshrl.u32 %v2997_v16, 7  ;;  %v3140_v22 = vld [vmem:[#allocation3] sm:$0xff] }
 0x622   : > { %v2978_v46 = vld [vmem:[#allocation2] sm:$0xff]  ;;  %v3141_v11 = vld [vmem:[#allocation3 + $0x8] sm:$0xff]  ;;  %v3144_v59 = vld [vmem:[#allocation4] sm:$0xff]  ;;  %p3786_p10 = scmp.ne.s32.totalorder %s4338_s29, 1 }
 0x623   : > { %3090 = vmatpush1.bf16.msra.mxu0 %v4209_v32  ;;  %v2999_v60 = vsub.s32 0, %v2998_v34  ;;  %v2995_v62 = vld [vmem:[%s935_s6] sm:$0x3]  ;;  %v3003_v27 = vsub.s32 1, %v2998_v34  ;;  %s5531_s5 = sld [smem:[#allocation25_spill]] (!%p3786_p10) }
 0x624   : > { %3091 = vmatprep.subr.bf16.mxu0 %v4210_v4  ;;  %v3145_v51 = vld [vmem:[#allocation4 + $0x8] sm:$0xff] }
 0x625   : > { %v3000_v40 = vrot.slane %v2995_v62, %v2999_v60  ;;  %v3004_v55 = vrot.slane %v2995_v62, %v3003_v27 }
 0x627   : > { %3092 = vmatpush1.bf16.msra.mxu0 %v4212_v33 }
 0x628   : > { %3093 = vmatprep.subr.bf16.mxu0 %v4213_v44 }
 0x62b   : > { %3094 = vmatpush1.bf16.msra.mxu0 %v4215_v8 }
 0x62c   : > { %3095 = vmatprep.subr.bf16.mxu0 %v4216_v49 }
 0x62f   : > { %3096 = vmatpush1.bf16.msra.mxu0 %v4218_v43 }
 0x630   : > { %3097 = vmatprep.subr.bf16.mxu0 %v4219_v21 }
 0x633   : > { %3098 = vmatpush1.bf16.msra.mxu0 %v4221_v2 }
 0x634   : > { %3099 = vmatprep.subr.bf16.mxu0 %v4222_v54 }
 0x637   : > { %3100 = vmatpush1.bf16.msra.mxu0 %v4224_v53 }
 0x638   : > { %3101 = vmatprep.subr.bf16.mxu0 %v4225_v47 }
 0x63b   : > { %3102 = vmatpush1.bf16.msra.mxu0 %v4227_v13 }
 0x63e   : > { %3120 = vmatmul.mubr.bf16.vlgmr.msra.gmra.mrb[0].mxu0 %v2978_v46 }
 0x711   : > { %v3121_v41 = vpop.f32.mrb[0].mxu0 }
 0x712   : > { %v3122_v35 = vadd.f32 %v3121_v41, %v3000_v40  ;;  %v3123_v42 = vpop.f32.mrb[1].mxu0 }
 0x713   : > { %v3124_v57 = vadd.f32 %v3123_v42, %v3004_v55  ;;  %v3125_v31 = vpop.f32.mrb[2].mxu0 }
 0x714   : > { %3130 = vst [vmem:[%s4709_s3] sm:$0xff] %v3122_v35  ;;  %v3126_v37 = vadd.f32 %v3125_v31, %v3000_v40  ;;  %v3127_v5 = vpop.f32.mrb[3].mxu0 }
 0x715   : > { %3131 = vst [vmem:[%s4709_s3 + $0x8] sm:$0xff] %v3124_v57  ;;  %v3128_v29 = vadd.f32 %v3127_v5, %v3004_v55  ;;  %v3134_v50 = vmax.f32 %v3122_v35, %v3124_v57 }
 0x716   : > { %3132 = vst [vmem:[%s4709_s3 + $0x10] sm:$0xff] %v3126_v37 }
 0x717   : > { %3133 = vst [vmem:[%s4709_s3 + $0x18] sm:$0xff] %v3128_v29  ;;  %3135 = vmax.xlane.f32.xlu0 %v3134_v50  ;;  %v3137_v15 = vmax.f32 %v3126_v37, %v3128_v29 }
 0x71b   : > { %3138 = vmax.xlane.f32.xlu0 %v3137_v15 }
 0x7a4   : > { %v3136_v7 = vpop.xlane.xlu0 %3135 }
 0x7a5   : > { %v3142_v19 = vmax.f32 %v3140_v22, %v3136_v7 }
 0x7a7   : > { %v3146_v14 = vsub.f32 %v3140_v22, %v3142_v19  ;;  %3187 = vst.msk [vmem:[#allocation3] sm:$0xff] %vm3184_vm10, %v3142_v19  ;;  %3156 = vperm.xlu1 %4202, %v3142_v19  }
 0x7a8   : > { %v3139_v39 = vpop.xlane.xlu0 %3138 }
 0x7a9   : > { %v3143_v36 = vmax.f32 %v3141_v11, %v3139_v39  ;;  %v3148_v30 = vmul.f32 1.442695, %v3146_v14 }
 0x7ab   : > { %v3147_v10 = vsub.f32 %v3141_v11, %v3143_v36  ;;  %3188 = vst.msk [vmem:[#allocation3 + $0x8] sm:$0xff] %vm3184_vm10, %v3143_v36  ;;  %3161 = vperm.xlu1 %4202, %v3143_v36  }
 0x7ad   : > { %v3150_v23 = vmul.f32 1.442695, %v3147_v10 }
 0x7ae   : > { %v3193_v43 = vld [vmem:[#allocation3] sm:$0xff] (!%p3786_p10) }
 0x7b2   : > { %v3194_v54 = vld [vmem:[#allocation3 + $0x8] sm:$0xff] (!%p3786_p10) }
 0x826   : > { %v3157_v1 = vpop.permute.xlu1 %3156 }
 0x827   : > { %v3164_v18 = vsub.f32 %v3122_v35, %v3157_v1  ;;  %v3165_v3 = vsub.f32 %v3124_v57, %v3157_v1 }
 0x829   : > { %v3168_v6 = vmul.f32 1.442695, %v3164_v18  ;;  %v3170_v26 = vmul.f32 1.442695, %v3165_v3 }
 0x82a   : > { %v3162_v0 = vpop.permute.xlu1 %3161 }
 0x82b   : > { %4228 = vpow2.f32 %v3168_v6  ;;  %v3166_v52 = vsub.f32 %v3126_v37, %v3162_v0  ;;  %v3167_v48 = vsub.f32 %v3128_v29, %v3162_v0 }
 0x82c   : > { %4230 = vpow2.f32 %v3170_v26 }
 0x82d   : > { %v3172_v25 = vmul.f32 1.442695, %v3166_v52  ;;  %v3174_v12 = vmul.f32 1.442695, %v3167_v48 }
 0x82f   : > { %4232 = vpow2.f32 %v3172_v25 }
 0x830   : > { %4234 = vpow2.f32 %v3174_v12 }
 0x831   : > { %4236 = vpow2.f32 %v3148_v30 }
 0x832   : > { %4238 = vpow2.f32 %v3150_v23 }
 0x835   : > { %v4229_v24 = vpop.eup %4228 }
 0x836   : > { %v4231_v58 = vpop.eup %4230 }
 0x837   : > { %v3176_v63 = vadd.f32 %v4231_v58, %v4229_v24 }
 0x839   : > { %v4233_v9 = vpop.eup %4232  ;;  %3177 = vadd.xlane.f32.xlu0 %v3176_v63 }
 0x83a   : > { %v4235_v56 = vpop.eup %4234 }
 0x83b   : > { %v3179_v61 = vadd.f32 %v4235_v56, %v4233_v9  ;;  %v4237_v28 = vpop.eup %4236 }
 0x83c   : > { %v3152_v45 = vmul.f32 %v4237_v28, %v3144_v59  ;;  %v4239_v38 = vpop.eup %4238 }
 0x83d   : > { %3180 = vadd.xlane.f32.xlu1 %v3179_v61  ;;  %v3153_v32 = vmul.f32 %v4239_v38, %v3145_v51 }
 0x8c6   : > { %v3178_v20 = vpop.xlane.xlu0 %3177 }
 0x8c7   : > { %v3182_v17 = vadd.f32 %v3178_v20, %v3152_v45  ;;  %3192 = sbr.rel (%p3786_p10) target bundleno = 2277 (0x8e5), region = 118 }
 0x8c9   : > { %3185 = vst.msk [vmem:[#allocation4] sm:$0xff] %vm3184_vm10, %v3182_v17 }
 0x8ca   : > { %v3181_v4 = vpop.xlane.xlu1 %3180 }
 0x8cb   : > { %v3183_v33 = vadd.f32 %v3181_v4, %v3153_v32 }
 0x8cd   : > { %3186 = vst.msk [vmem:[#allocation4 + $0x8] sm:$0xff] %vm3184_vm10, %v3183_v33 }
 0x8d0   : > { %v3195_v44 = vld [vmem:[#allocation4] sm:$0xff] }
 0x8d1   : > { %4240 = vlog2.f32 %v3195_v44 }
 0x8d4   : > { %v3196_v8 = vld [vmem:[#allocation4 + $0x8] sm:$0xff] }
 0x8d5   : > { %4242 = vlog2.f32 %v3196_v8 }
 0x8db   : > { %v4241_v49 = vpop.eup %4240 }
 0x8dc   : > { %v3198_v2 = vmul.f32 0.6931472, %v4241_v49 }
 0x8de   : > { %v3201_v47 = vadd.f32 %v3198_v2, %v3193_v43 }
 0x8df   : > { %v4243_v21 = vpop.eup %4242 }
 0x8e0   : > { %v3200_v53 = vmul.f32 0.6931472, %v4243_v21  ;;  %3203 = vst.msk [vmem:[%s5531_s5] sm:$0xff] %vm3184_vm10, %v3201_v47 }
 0x8e2   : > { %v3202_v13 = vadd.f32 %v3200_v53, %v3194_v54 }
 0x8e4   : > { %3204 = vst.msk [vmem:[%s5531_s5 + $0x8] sm:$0xff] %vm3184_vm10, %v3202_v13 }
 0x8e5 PF: > { %s5532_s29 = sld [smem:[#allocation21_spill]] }
 0x8eb   : > { %p5533_p12 = scmp.ne.s32.totalorder %s5532_s29, 0 }
 0x8ec   : > { %s5534_s12 = sld [smem:[#allocation13_spill]] (%p5533_p12)  ;;  %v3254_v46 = vld [vmem:[%s4709_s3] sm:$0xff] (%p5533_p12)  ;;  %v3256_v16 = vld [vmem:[%s4709_s3 + $0x8] sm:$0xff] (%p5533_p12)  ;;  %v3258_v34 = vld [vmem:[%s4709_s3 + $0x10] sm:$0xff] (%p5533_p12) }
 0x8ed   : > { %3236 = sbr.rel (!%p5533_p12) target bundleno = 2296 (0x8f8), region = 122  ;;  %v3260_v60 = vld [vmem:[%s4709_s3 + $0x18] sm:$0xff] (%p5533_p12)  ;;  %s5535_s27 = sld [smem:[#allocation38_spill]] (%p5533_p12) }
 0x8f2   : > { %s3789_s21 = sshll.u32 (%p5533_p12), %s5534_s12, 3 }
 0x8f3   : > { %s3239_s10 = sadd.s32 (%p5533_p12), %s3789_s21, %s4623_s9 }
 0x8f4   : > { %s3790_s23 = sshll.u32 %s3239_s10, 3 }
 0x8f5   : > { %s3241_s4 = scalar_lea.vmem %s5535_s27, %s3790_s23 }
 0x8f6   : > { %3255 = vst [vmem:[%s3241_s4] sm:$0xff] %v3254_v46  ;;  %3257 = vst [vmem:[%s3241_s4 + $0x8] sm:$0xff] %v3256_v16 }
 0x8f7   : > { %3259 = vst [vmem:[%s3241_s4 + $0x20] sm:$0xff] %v3258_v34  ;;  %3261 = vst [vmem:[%s3241_s4 + $0x28] sm:$0xff] %v3260_v60 }
 0x8f8 PF: > { %s5536_s16 = sld [smem:[#allocation16_spill]]  ;;  %s5537_s24 = sld [smem:[#allocation10_spill]] }
 0x8f9   : > { %s5538_s25 = sld [smem:[#allocation20_spill]]  ;;  %s5540_s27 = sld [smem:[#allocation12_spill]] }
 0x8fa   : > { %s5539_s26 = sld [smem:[#allocation11_spill]]  ;;  %s5541_s28 = sld [smem:[#allocation19_spill]] }
 0x8fb   : > { %s5542_s29 = sld [smem:[#allocation14_spill]]  ;;  %s5543_s0 = sld [smem:[#allocation15_spill]] }
 0x8fc   : > { %s5544_s30 = sld [smem:[#allocation17_spill]]  ;;  %s5545_s18 = sld [smem:[#allocation18_spill]] }
 0x8fe   : > { %s31_s19 = sadd.s32 1, %s5536_s16  }
 0x8ff   : > { %p28_p0 = scmp.ge.s32.totalorder %s31_s19, 6  }
 0x901   :  { %30 = sbr.rel (!%p28_p0) target bundleno = 25 (0x19), region = 275 }
 0x908   :  { %3332 = vsyncpa [#allocation6], 1 }
 0x909   :  { %3334 = vsyncpa [#allocation6 + $0x1], 1 }

</bundles_post_ra>
